<compile_context>
chip_gen: v7x
topology: tpu7x:2x2x1
jax: 0.10.0
libtpu: 0.0.40
codegen_flags: <defaults>
</compile_context>

<pallas_src>
import math

import jax
import jax.numpy as jnp
from jax.experimental import pallas as pl
from jax.experimental.pallas import tpu as pltpu


# --------------------------- pass 1: conv + stats ---------------------------

def conv_stats_kernel(x_ref, w_ref, conv_ref, stats_ref):
    """x_ref:    (1, H+2, W+2, Cin)  padded image of one batch element (bf16/f32)
       w_ref:    (9, Cin, Cout)      conv taps, tap order dh*3+dw
       conv_ref: (1, th, W, Cout)    f32 conv output tile
       stats_ref:(1, 1, 2, Cout)     f32 per-tile [channel sum; channel sum-of-squares]"""
    th, W, Cout = conv_ref.shape[1], conv_ref.shape[2], conv_ref.shape[3]
    Cin = x_ref.shape[3]

    # First output row of this tile; load the th+2 halo rows once from VMEM.
    r0 = pl.multiple_of(pl.program_id(1) * th, th)
    patch = x_ref[0, pl.ds(r0, th + 2), :, :]               # (th+2, W+2, Cin)

    # 9 shifted taps built in-register from the resident patch; f32 accumulation.
    # TODO(synk): for large-Cin layers, fold the 9 taps into a single K=9*Cin
    #             matmul (in-kernel lane concat) to fill the 256-deep MXU on v6e/v7x.
    acc = None
    for dh in range(3):                                      # static unroll
        for dw in range(3):
            xs = patch[dh:dh + th, dw:dw + W, :].reshape(th * W, Cin)
            part = jnp.dot(xs, w_ref[dh * 3 + dw],
                           preferred_element_type=jnp.float32)
            acc = part if acc is None else acc + part

    conv_ref[...] = acc.reshape(1, th, W, Cout)
    s = jnp.sum(acc, axis=0, keepdims=True)                  # (1, Cout)
    ss = jnp.sum(acc * acc, axis=0, keepdims=True)           # (1, Cout)
    stats_ref[...] = jnp.concatenate([s, ss], axis=0).reshape(1, 1, 2, Cout)


# --------------------------- pass 2: fused BN affine + ReLU ------------------

def bn_relu_kernel(x_ref, scale_ref, shift_ref, o_ref):
    """x_ref: (tr, L) f32 conv values; scale/shift: (1, L) f32; o_ref: (tr, L)."""
    o_ref[...] = jnp.maximum(x_ref[...] * scale_ref[...] + shift_ref[...],
                             0.0).astype(o_ref.dtype)


# --------------------------- wrapper -----------------------------------------

def _largest_divisor(n, cap, multiple=1):
    """Largest divisor of n that is <= cap and a multiple of `multiple`, else None."""
    best = None
    for d in range(1, n + 1):
        if n % d == 0 and d <= cap and d % multiple == 0:
            best = d
    return best


def cbr_forward(x_nchw, w_oihw, gamma, beta, eps=1e-5,
                compute_dtype=jnp.bfloat16):
    """CBR forward (training-mode BN batch statistics).  Input/output NCHW."""
    N, Cin, H, W = x_nchw.shape
    Cout = w_oihw.shape[0]
    vmem_params = dict(vmem_limit_bytes=48 * 1024 * 1024)   # headroom under v7x 64 MiB

    # glue: NCHW -> NHWC, zero pad (conv padding=1), single cast to the MXU dtype.
    x_nhwc = jnp.transpose(x_nchw, (0, 2, 3, 1))
    xp = jnp.pad(x_nhwc, ((0, 0), (1, 1), (1, 1), (0, 0))).astype(compute_dtype)

    # glue: weight (O, I, kh, kw) -> (kh*kw, I, O), tap order dh*3+dw.
    w_taps = jnp.transpose(w_oihw, (2, 3, 1, 0)).reshape(9, Cin, Cout)
    w_taps = w_taps.astype(compute_dtype)

    # ---- pass 1: conv3x3 + per-tile channel sum / sum-of-squares ------------
    th = _largest_divisor(H, max(1, 1024 // W))              # ~<=1024 matmul rows/tile
    n_ht = H // th

    conv, stats = pl.pallas_call(
        conv_stats_kernel,
        out_shape=(jax.ShapeDtypeStruct((N, H, W, Cout), jnp.float32),
                   jax.ShapeDtypeStruct((N, n_ht, 2, Cout), jnp.float32)),
        grid=(N, n_ht),
        in_specs=[
            pl.BlockSpec((1, H + 2, W + 2, Cin), lambda n, h: (n, 0, 0, 0)),
            pl.BlockSpec((9, Cin, Cout), lambda n, h: (0, 0, 0)),
        ],
        out_specs=(
            pl.BlockSpec((1, th, W, Cout), lambda n, h: (n, h, 0, 0)),
            pl.BlockSpec((1, 1, 2, Cout), lambda n, h: (n, h, 0, 0)),
        ),
        compiler_params=pltpu.CompilerParams(
            dimension_semantics=("parallel", "parallel"), **vmem_params),
    )(xp, w_taps)

    # glue: reduce partial stats, fold BN into one per-channel scale/shift.
    cnt = jnp.float32(N * H * W)
    ch_sum = jnp.sum(stats[:, :, 0, :], axis=(0, 1))
    ch_sq = jnp.sum(stats[:, :, 1, :], axis=(0, 1))
    mean = ch_sum / cnt
    var = jnp.maximum(ch_sq / cnt - mean * mean, 0.0)        # biased batch variance
    scale = gamma.astype(jnp.float32) * jax.lax.rsqrt(var + eps)
    shift = beta.astype(jnp.float32) - mean * scale

    # ---- pass 2: lane-dense fused affine + ReLU -----------------------------
    total = N * H * W * Cout
    if Cout < 128 and 128 % Cout == 0 and total % 128 == 0:
        reps = 128 // Cout        # view the channels-last slab as (rows, 128) lanes
    else:
        reps = 1                  # Cout already >= 128 (lane-dense) or odd shapes
    L = Cout * reps
    rows = total // L
    flat = conv.reshape(rows, L)                              # free reshape in HBM
    scale_row = jnp.tile(scale, reps).reshape(1, L)
    shift_row = jnp.tile(shift, reps).reshape(1, L)

    tr = _largest_divisor(rows, 1024, multiple=8) or rows
    out_flat = pl.pallas_call(
        bn_relu_kernel,
        out_shape=jax.ShapeDtypeStruct((rows, L), jnp.float32),
        grid=(rows // tr,),
        in_specs=[pl.BlockSpec((tr, L), lambda i: (i, 0)),
                  pl.BlockSpec((1, L), lambda i: (0, 0)),
                  pl.BlockSpec((1, L), lambda i: (0, 0))],
        out_specs=pl.BlockSpec((tr, L), lambda i: (i, 0)),
        compiler_params=pltpu.CompilerParams(
            dimension_semantics=("parallel",), **vmem_params),
    )(flat, scale_row, shift_row)

    # glue: (rows, L) -> NHWC -> NCHW
    y = out_flat.reshape(N, H, W, Cout)
    return jnp.transpose(y, (0, 3, 1, 2)).astype(x_nchw.dtype)


# --------------------------- reference ---------------------------------------

def reference_cbr(x_nchw, w_oihw, gamma, beta, eps=1e-5):
    """Pure-JAX f32 reference (lax conv + training-mode BN + ReLU), NCHW."""
    y = jax.lax.conv_general_dilated(
        x_nchw.astype(jnp.float32), w_oihw.astype(jnp.float32),
        window_strides=(1, 1), padding=((1, 1), (1, 1)),
        dimension_numbers=("NCHW", "OIHW", "NCHW"))
    mean = jnp.mean(y, axis=(0, 2, 3), keepdims=True)
    var = jnp.mean((y - mean) ** 2, axis=(0, 2, 3), keepdims=True)
    y = (y - mean) * jax.lax.rsqrt(var + eps)
    y = y * gamma.reshape(1, -1, 1, 1) + beta.reshape(1, -1, 1, 1)
    return jnp.maximum(y, 0.0)


if __name__ == "__main__":
    # small shapes consistent with the module: NCHW input
    N, Cin, H, W = 2, 4, 16, 16
    Cout = 8

    key = jax.random.PRNGKey(0)
    kx, kw = jax.random.split(key)

    x = jax.random.normal(kx, (N, Cin, H, W), dtype=jnp.float32)

    # Conv2d weight (Cout, Cin, 3, 3): kaiming_normal_, mode='fan_out', relu
    fan_out = Cout * 3 * 3
    std = math.sqrt(2.0 / fan_out)
    w = jax.random.normal(kw, (Cout, Cin, 3, 3), dtype=jnp.float32) * std

    # BatchNorm2d params: weight=1, bias=0 (as in the module's __init__)
    gamma = jnp.ones((Cout,), dtype=jnp.float32)
    beta = jnp.zeros((Cout,), dtype=jnp.float32)

    ref = reference_cbr(x, w, gamma, beta)

    # 1) f32 MXU path: validates the tiled conv + two-pass BN algorithm exactly.
    out_f32 = jax.block_until_ready(
        cbr_forward(x, w, gamma, beta, compute_dtype=jnp.float32))
    assert out_f32.shape == (N, Cout, H, W), out_f32.shape
    assert jnp.allclose(out_f32, ref, atol=1e-4, rtol=1e-4), float(
        jnp.max(jnp.abs(out_f32 - ref)))

    # 2) optimized bf16 MXU path (f32 accumulation + f32 BN/ReLU epilogue);
    #    looser tolerance accounts only for bf16 input quantization.
    out_bf16 = jax.block_until_ready(
        cbr_forward(x, w, gamma, beta, compute_dtype=jnp.bfloat16))
    assert out_bf16.shape == (N, Cout, H, W), out_bf16.shape
    assert jnp.allclose(out_bf16, ref, atol=5e-2, rtol=5e-2), float(
        jnp.max(jnp.abs(out_bf16 - ref)))

    print("KERNEL_OK")
</pallas_src>

<mosaic_0001>
module attributes {stable_mosaic.version = 11 : i64} {
  func.func @conv_stats_kernel(%arg0: i32, %arg1: i32, %arg2: memref<1x18x18x4xf32, #tpu.memory_space<vmem>>, %arg3: memref<9x4x8xf32, #tpu.memory_space<vmem>>, %arg4: memref<1x16x16x8xf32, #tpu.memory_space<vmem>>, %arg5: memref<1x1x2x8xf32, #tpu.memory_space<vmem>>) attributes {dimension_semantics = [#tpu.dimension_semantics<parallel>, #tpu.dimension_semantics<parallel>], iteration_bounds = array<i64: 2, 1>, scalar_prefetch = 0 : i64, scratch_operands = 0 : i64, tpu.core_type = #tpu.core_type<tc>, window_params = [{transform_indices = @transform_0, window_bounds = array<i64: 1, 18, 18, 4>}, {pipeline_mode = #tpu.pipeline_mode<synchronous>, transform_indices = @transform_1, window_bounds = array<i64: 9, 4, 8>}, {transform_indices = @transform_2, window_bounds = array<i64: 1, 16, 16, 8>}, {transform_indices = @transform_3, window_bounds = array<i64: 1, 1, 2, 8>}]} {
    %c16_i32 = arith.constant 16 : i32
    %0 = arith.muli %arg1, %c16_i32 : i32
    %1 = tpu.assume_multiple %0, 16 : i32
    %c0 = arith.constant 0 : index
    %2 = arith.index_cast %1 : i32 to index
    %c0_0 = arith.constant 0 : index
    %c0_1 = arith.constant 0 : index
    %3 = vector.load %arg2[%c0, %2, %c0_0, %c0_1] : memref<1x18x18x4xf32, #tpu.memory_space<vmem>>, vector<1x18x18x4xf32>
    %4 = vector.shape_cast %3 : vector<1x18x18x4xf32> to vector<18x18x4xf32>
    %5 = vector.extract_strided_slice %4 {offsets = [0, 0, 0], sizes = [16, 16, 4], strides = [1, 1, 1]} : vector<18x18x4xf32> to vector<16x16x4xf32>
    %6 = vector.shape_cast %5 : vector<16x16x4xf32> to vector<256x4xf32>
    %c0_2 = arith.constant 0 : index
    %c0_3 = arith.constant 0 : index
    %c0_4 = arith.constant 0 : index
    %7 = vector.load %arg3[%c0_2, %c0_3, %c0_4] : memref<9x4x8xf32, #tpu.memory_space<vmem>>, vector<1x4x8xf32>
    %8 = vector.shape_cast %7 : vector<1x4x8xf32> to vector<4x8xf32>
    %cst = arith.constant dense<0.000000e+00> : vector<256x8xf32>
    %9 = tpu.matmul %6, %8, %cst {dimension_numbers = #tpu.dot_dimension_numbers<[1], [0], [0], [1], [0, 0, 1, 1], [], []>} : vector<256x4xf32>, vector<4x8xf32>, vector<256x8xf32> -> vector<256x8xf32>
    %10 = vector.extract_strided_slice %4 {offsets = [0, 1, 0], sizes = [16, 16, 4], strides = [1, 1, 1]} : vector<18x18x4xf32> to vector<16x16x4xf32>
    %11 = vector.shape_cast %10 : vector<16x16x4xf32> to vector<256x4xf32>
    %c1 = arith.constant 1 : index
    %c0_5 = arith.constant 0 : index
    %c0_6 = arith.constant 0 : index
    %12 = vector.load %arg3[%c1, %c0_5, %c0_6] : memref<9x4x8xf32, #tpu.memory_space<vmem>>, vector<1x4x8xf32>
    %13 = vector.shape_cast %12 : vector<1x4x8xf32> to vector<4x8xf32>
    %cst_7 = arith.constant dense<0.000000e+00> : vector<256x8xf32>
    %14 = tpu.matmul %11, %13, %cst_7 {dimension_numbers = #tpu.dot_dimension_numbers<[1], [0], [0], [1], [0, 0, 1, 1], [], []>} : vector<256x4xf32>, vector<4x8xf32>, vector<256x8xf32> -> vector<256x8xf32>
    %15 = arith.addf %9, %14 : vector<256x8xf32>
    %16 = vector.extract_strided_slice %4 {offsets = [0, 2, 0], sizes = [16, 16, 4], strides = [1, 1, 1]} : vector<18x18x4xf32> to vector<16x16x4xf32>
    %17 = vector.shape_cast %16 : vector<16x16x4xf32> to vector<256x4xf32>
    %c2 = arith.constant 2 : index
    %c0_8 = arith.constant 0 : index
    %c0_9 = arith.constant 0 : index
    %18 = vector.load %arg3[%c2, %c0_8, %c0_9] : memref<9x4x8xf32, #tpu.memory_space<vmem>>, vector<1x4x8xf32>
    %19 = vector.shape_cast %18 : vector<1x4x8xf32> to vector<4x8xf32>
    %cst_10 = arith.constant dense<0.000000e+00> : vector<256x8xf32>
    %20 = tpu.matmul %17, %19, %cst_10 {dimension_numbers = #tpu.dot_dimension_numbers<[1], [0], [0], [1], [0, 0, 1, 1], [], []>} : vector<256x4xf32>, vector<4x8xf32>, vector<256x8xf32> -> vector<256x8xf32>
    %21 = arith.addf %15, %20 : vector<256x8xf32>
    %22 = vector.extract_strided_slice %4 {offsets = [1, 0, 0], sizes = [16, 16, 4], strides = [1, 1, 1]} : vector<18x18x4xf32> to vector<16x16x4xf32>
    %23 = vector.shape_cast %22 : vector<16x16x4xf32> to vector<256x4xf32>
    %c3 = arith.constant 3 : index
    %c0_11 = arith.constant 0 : index
    %c0_12 = arith.constant 0 : index
    %24 = vector.load %arg3[%c3, %c0_11, %c0_12] : memref<9x4x8xf32, #tpu.memory_space<vmem>>, vector<1x4x8xf32>
    %25 = vector.shape_cast %24 : vector<1x4x8xf32> to vector<4x8xf32>
    %cst_13 = arith.constant dense<0.000000e+00> : vector<256x8xf32>
    %26 = tpu.matmul %23, %25, %cst_13 {dimension_numbers = #tpu.dot_dimension_numbers<[1], [0], [0], [1], [0, 0, 1, 1], [], []>} : vector<256x4xf32>, vector<4x8xf32>, vector<256x8xf32> -> vector<256x8xf32>
    %27 = arith.addf %21, %26 : vector<256x8xf32>
    %28 = vector.extract_strided_slice %4 {offsets = [1, 1, 0], sizes = [16, 16, 4], strides = [1, 1, 1]} : vector<18x18x4xf32> to vector<16x16x4xf32>
    %29 = vector.shape_cast %28 : vector<16x16x4xf32> to vector<256x4xf32>
    %c4 = arith.constant 4 : index
    %c0_14 = arith.constant 0 : index
    %c0_15 = arith.constant 0 : index
    %30 = vector.load %arg3[%c4, %c0_14, %c0_15] : memref<9x4x8xf32, #tpu.memory_space<vmem>>, vector<1x4x8xf32>
    %31 = vector.shape_cast %30 : vector<1x4x8xf32> to vector<4x8xf32>
    %cst_16 = arith.constant dense<0.000000e+00> : vector<256x8xf32>
    %32 = tpu.matmul %29, %31, %cst_16 {dimension_numbers = #tpu.dot_dimension_numbers<[1], [0], [0], [1], [0, 0, 1, 1], [], []>} : vector<256x4xf32>, vector<4x8xf32>, vector<256x8xf32> -> vector<256x8xf32>
    %33 = arith.addf %27, %32 : vector<256x8xf32>
    %34 = vector.extract_strided_slice %4 {offsets = [1, 2, 0], sizes = [16, 16, 4], strides = [1, 1, 1]} : vector<18x18x4xf32> to vector<16x16x4xf32>
    %35 = vector.shape_cast %34 : vector<16x16x4xf32> to vector<256x4xf32>
    %c5 = arith.constant 5 : index
    %c0_17 = arith.constant 0 : index
    %c0_18 = arith.constant 0 : index
    %36 = vector.load %arg3[%c5, %c0_17, %c0_18] : memref<9x4x8xf32, #tpu.memory_space<vmem>>, vector<1x4x8xf32>
    %37 = vector.shape_cast %36 : vector<1x4x8xf32> to vector<4x8xf32>
    %cst_19 = arith.constant dense<0.000000e+00> : vector<256x8xf32>
    %38 = tpu.matmul %35, %37, %cst_19 {dimension_numbers = #tpu.dot_dimension_numbers<[1], [0], [0], [1], [0, 0, 1, 1], [], []>} : vector<256x4xf32>, vector<4x8xf32>, vector<256x8xf32> -> vector<256x8xf32>
    %39 = arith.addf %33, %38 : vector<256x8xf32>
    %40 = vector.extract_strided_slice %4 {offsets = [2, 0, 0], sizes = [16, 16, 4], strides = [1, 1, 1]} : vector<18x18x4xf32> to vector<16x16x4xf32>
    %41 = vector.shape_cast %40 : vector<16x16x4xf32> to vector<256x4xf32>
    %c6 = arith.constant 6 : index
    %c0_20 = arith.constant 0 : index
    %c0_21 = arith.constant 0 : index
    %42 = vector.load %arg3[%c6, %c0_20, %c0_21] : memref<9x4x8xf32, #tpu.memory_space<vmem>>, vector<1x4x8xf32>
    %43 = vector.shape_cast %42 : vector<1x4x8xf32> to vector<4x8xf32>
    %cst_22 = arith.constant dense<0.000000e+00> : vector<256x8xf32>
    %44 = tpu.matmul %41, %43, %cst_22 {dimension_numbers = #tpu.dot_dimension_numbers<[1], [0], [0], [1], [0, 0, 1, 1], [], []>} : vector<256x4xf32>, vector<4x8xf32>, vector<256x8xf32> -> vector<256x8xf32>
    %45 = arith.addf %39, %44 : vector<256x8xf32>
    %46 = vector.extract_strided_slice %4 {offsets = [2, 1, 0], sizes = [16, 16, 4], strides = [1, 1, 1]} : vector<18x18x4xf32> to vector<16x16x4xf32>
    %47 = vector.shape_cast %46 : vector<16x16x4xf32> to vector<256x4xf32>
    %c7 = arith.constant 7 : index
    %c0_23 = arith.constant 0 : index
    %c0_24 = arith.constant 0 : index
    %48 = vector.load %arg3[%c7, %c0_23, %c0_24] : memref<9x4x8xf32, #tpu.memory_space<vmem>>, vector<1x4x8xf32>
    %49 = vector.shape_cast %48 : vector<1x4x8xf32> to vector<4x8xf32>
    %cst_25 = arith.constant dense<0.000000e+00> : vector<256x8xf32>
    %50 = tpu.matmul %47, %49, %cst_25 {dimension_numbers = #tpu.dot_dimension_numbers<[1], [0], [0], [1], [0, 0, 1, 1], [], []>} : vector<256x4xf32>, vector<4x8xf32>, vector<256x8xf32> -> vector<256x8xf32>
    %51 = arith.addf %45, %50 : vector<256x8xf32>
    %52 = vector.extract_strided_slice %4 {offsets = [2, 2, 0], sizes = [16, 16, 4], strides = [1, 1, 1]} : vector<18x18x4xf32> to vector<16x16x4xf32>
    %53 = vector.shape_cast %52 : vector<16x16x4xf32> to vector<256x4xf32>
    %c8 = arith.constant 8 : index
    %c0_26 = arith.constant 0 : index
    %c0_27 = arith.constant 0 : index
    %54 = vector.load %arg3[%c8, %c0_26, %c0_27] : memref<9x4x8xf32, #tpu.memory_space<vmem>>, vector<1x4x8xf32>
    %55 = vector.shape_cast %54 : vector<1x4x8xf32> to vector<4x8xf32>
    %cst_28 = arith.constant dense<0.000000e+00> : vector<256x8xf32>
    %56 = tpu.matmul %53, %55, %cst_28 {dimension_numbers = #tpu.dot_dimension_numbers<[1], [0], [0], [1], [0, 0, 1, 1], [], []>} : vector<256x4xf32>, vector<4x8xf32>, vector<256x8xf32> -> vector<256x8xf32>
    %57 = arith.addf %51, %56 : vector<256x8xf32>
    %58 = vector.shape_cast %57 : vector<256x8xf32> to vector<1x16x16x8xf32>
    %c0_29 = arith.constant 0 : index
    %c0_30 = arith.constant 0 : index
    %c0_31 = arith.constant 0 : index
    %c0_32 = arith.constant 0 : index
    %59 = vector.load %arg4[%c0_29, %c0_30, %c0_31, %c0_32] : memref<1x16x16x8xf32, #tpu.memory_space<vmem>>, vector<1x16x16x8xf32>
    tpu.vector_store %arg4[%c0_29, %c0_30, %c0_31, %c0_32], %58 {strides = array<i32>} : memref<1x16x16x8xf32, #tpu.memory_space<vmem>>, vector<1x16x16x8xf32>,
    %cst_33 = arith.constant dense<0.000000e+00> : vector<8xf32>
    %60 = vector.multi_reduction <add>, %57, %cst_33 [0] : vector<256x8xf32> to vector<8xf32>
    %61 = vector.shape_cast %60 : vector<8xf32> to vector<1x8xf32>
    %62 = arith.mulf %57, %57 : vector<256x8xf32>
    %cst_34 = arith.constant dense<0.000000e+00> : vector<8xf32>
    %63 = vector.multi_reduction <add>, %62, %cst_34 [0] : vector<256x8xf32> to vector<8xf32>
    %64 = vector.shape_cast %63 : vector<8xf32> to vector<1x8xf32>
    %65 = tpu.concatenate %61, %64 in 0 : vector<1x8xf32>, vector<1x8xf32> -> vector<2x8xf32>
    %66 = vector.shape_cast %65 : vector<2x8xf32> to vector<1x1x2x8xf32>
    %c0_35 = arith.constant 0 : index
    %c0_36 = arith.constant 0 : index
    %c0_37 = arith.constant 0 : index
    %c0_38 = arith.constant 0 : index
    %67 = vector.load %arg5[%c0_35, %c0_36, %c0_37, %c0_38] : memref<1x1x2x8xf32, #tpu.memory_space<vmem>>, vector<1x1x2x8xf32>
    tpu.vector_store %arg5[%c0_35, %c0_36, %c0_37, %c0_38], %66 {strides = array<i32>} : memref<1x1x2x8xf32, #tpu.memory_space<vmem>>, vector<1x1x2x8xf32>,
    return
  }
  func.func @transform_0(%arg0: i32, %arg1: i32) -> (i32, i32, i32, i32) {
    %c0_i32 = arith.constant 0 : i32
    %c0_i32_0 = arith.constant 0 : i32
    %c0_i32_1 = arith.constant 0 : i32
    %c0_i32_2 = arith.constant 0 : i32
    return %arg0, %c0_i32, %c0_i32_0, %c0_i32_1 : i32, i32, i32, i32
  }
  func.func @transform_1(%arg0: i32, %arg1: i32) -> (i32, i32, i32) {
    %c0_i32 = arith.constant 0 : i32
    %c0_i32_0 = arith.constant 0 : i32
    %c0_i32_1 = arith.constant 0 : i32
    %c0_i32_2 = arith.constant 0 : i32
    return %c0_i32, %c0_i32_0, %c0_i32_1 : i32, i32, i32
  }
  func.func @transform_2(%arg0: i32, %arg1: i32) -> (i32, i32, i32, i32) {
    %c0_i32 = arith.constant 0 : i32
    %c0_i32_0 = arith.constant 0 : i32
    %c0_i32_1 = arith.constant 0 : i32
    return %arg0, %arg1, %c0_i32, %c0_i32_0 : i32, i32, i32, i32
  }
  func.func @transform_3(%arg0: i32, %arg1: i32) -> (i32, i32, i32, i32) {
    %c0_i32 = arith.constant 0 : i32
    %c0_i32_0 = arith.constant 0 : i32
    %c0_i32_1 = arith.constant 0 : i32
    return %arg0, %arg1, %c0_i32, %c0_i32_0 : i32, i32, i32, i32
  }
}

</mosaic_0001>

<bundles_post_ra>
// kernel: tpu_custom_call.1
= control target key start
LH: loop header
LB: loop body
LE: loop exit
PB: predicated region body
PF: predicated region fallthrough
CT: control target
= control target key end

     0   :  { %9 = vsyncpa [#allocation3], 0  ;;  %s6220_s0 = inlined_call_operand.vmem [shape: f32[2,18,18,4], index: 0, kind: input, shape index: {}]   ;;  %s6221_s1 = inlined_call_operand.vmem [shape: f32[9,4,8], index: 1, kind: input, shape index: {}]   ;;  %s6222_s2 = inlined_call_operand.vmem [shape: f32[2,16,16,8], index: 2, kind: output, shape index: {0}]   ;;  %s6223_s3 = inlined_call_operand.hbm [shape: f32[2,1,2,8], index: 3, kind: output, shape index: {1}]  }
   0x1   :  { %11 = vsyncpa [#allocation3 + $0x1], 0  ;;  %s4842_s12 = smov 0   ;;  %s4844_s13 = smov 0  }
   0x2   :  { %s4846_s14 = smov 0   ;;  %s4848_s15 = smov 0  }
   0x3   :  { %s4850_s16 = smov 0   ;;  %s4852_s17 = smov 0  }
   0x4 LB: > { %s3361_s18 = sadd.s32 4294967295, %s4819_s17   ;;  %s3362_s19 = sadd.s32 4294967294, %s4819_s17   ;;  %s4819_s17 = sphi %s4852_s17, %s17_s17   ;;  %s4815_s16 = sphi %s4850_s16, %s6404_s16   ;;  %s4811_s15 = sphi %s4848_s15, %s6403_s15   ;;  %s4807_s14 = sphi %s4846_s14, %s6402_s14   ;;  %s4803_s13 = sphi %s4844_s13, %s6401_s13   ;;  %s4799_s12 = sphi %s4842_s12, %s6400_s12  }
   0x5   : > { %s29_s20 = sadd.s32 1, %s4815_s16  ;;  %s113_s21 = sadd.s32 1, %s4807_s14 }
   0x6   : > { %p31_p0 = scmp.ge.s32.totalorder %s29_s20, 2  ;;  %p123_p1 = scmp.ne.s32.totalorder %s4807_s14, %s4803_s13 }
   0x7   : > { %p124_p2 = scmp.eq.s32.totalorder %s3361_s18, 1  ;;  %p129_p3 = scmp.ne.s32.totalorder %s4803_s13, %s4799_s12 }
   0x8   : > { %s6406_s20 = smov (%p31_p0, %s29_s20), 0  ;;  %p130_p5 = scmp.eq.s32.totalorder %s3362_s19, 1 }
   0x9   : > { %p4882_p4 = por %p124_p2, %p123_p1  ;;  %s108_s23 = ssub.s32 %s4815_s16, %s6406_s20 }
   0xa   : > { %p3365_p6 = scmp.ge.s32.totalorder %s4819_s17, 1  ;;  %p111_p7 = scmp.eq.s32.totalorder %s108_s23, 0 }
   0xb   : > { %p4889_p8 = por %p130_p5, %p129_p3  ;;  %p159_p9 = scmp.lt.s32.totalorder %s4819_s17, 3 }
   0xc   : > { %s4895_s25 = scalar_select %p111_p7, %s4807_s14, %s113_s21  }
   0xd   : > { %p160_p10 = pnand %p3365_p6, %p159_p9 }
   0xf   : > { %163 = sbr.rel (%p160_p10) target bundleno = 568 (0x238), region = 28 }
  0x16   : > { %v3370_v0 = vld [vmem:[%s6221_s1 + $0x4] sm:$0xf]  ;;  %vm463_vm0 = vcmask 1043456   ;;  %v4903_v1 = vld [vmem:[%s6221_s1 + $0x10] sm:$0xf]  ;;  %p193_p11 = scmp.lt.s32.totalorder %s4811_s15, 1 }
  0x17   : > { %3977 = vmatprep.subr.msk.mxu1 %vm463_vm0, %v3370_v0  ;;  %4177 = vmatprep.subr.msk.mxu0 %vm463_vm0, %v4903_v1  ;;  %v266_v2 = vld [vmem:[%s6221_s1] sm:$0xf]  ;;  %v3539_v3 = vld [vmem:[%s6221_s1 + $0x14] sm:$0xf]  ;;  %vm315_vm1 = vcmask 1046528   ;;  %vm398_vm2 = vcmask 31744  }
  0x18   : > { %3978 = vmatpush3.msk.msra.mxu1 %vm463_vm0, %v3370_v0  ;;  %4178 = vmatpush3.msk.msra.mxu0 %vm463_vm0, %v4903_v1  ;;  %s4919_s7 = scalar_select %p193_p11, %s4811_s15, 1  ;;  %v4992_v33 = vld [vmem:[%s6221_s1 + $0x18] sm:$0xf]  ;;  %v5002_v35 = vld [vmem:[%s6221_s1 + $0x8] sm:$0xf]  ;;  %vm984_vm3 = vcmask 1045504  }
  0x19   : > { %4027 = vmatprep.subr.msk.mxu1 %vm463_vm0, %v266_v2  ;;  %4227 = vmatprep.subr.msk.mxu0 %vm463_vm0, %v3539_v3  ;;  %vm3013_vm4 = vcmask 64512   ;;  %vm3216_vm5 = vcmask 1040384   ;;  %vm3218_vm6 = vcmask 58368   ;;  %s4821_s28 = smov [#allocation2]  }
  0x1a   : > { %s4685_s8 = smul.u32 432, %s4919_s7  ;;  %s3679_s5 = sshll.u32 %s4919_s7, 8 }
  0x1b   : > { %s6030_s9 = scalar_lea.vmem %s6222_s2, %s3679_s5  ;;  %s190_s7 = sand.u32 1, %s4803_s13  }
  0x1c   : > { %s4927_s11 = scalar_lea.vmem %s6220_s0, %s4685_s8  ;;  %s3366_s10 = sshll.u32 %s190_s7, 1 }
  0x1d   : > { %v4930_v4 = vld [vmem:[%s4927_s11] sm:$0xff]  ;;  %v4933_v5 = vld [vmem:[%s4927_s11 + $0x8] sm:$0xff]  ;;  %v4936_v6 = vld [vmem:[%s4927_s11 + $0x18] sm:$0xff]  ;;  %s192_s18 = scalar_lea.vmem [#allocation2], %s3366_s10  ;;  %s3231_s27 = scalar_lea.sflag [#allocation3], %s190_s7 }
  0x1e   : > { %6299 = vst [vmem:[#allocation5_spill] sm:$0xff] %v4936_v6  ;;  %v316_v7 = vrot.slane %v4930_v4, 1  ;;  %v317_v8 = vrot.slane %v4933_v5, 1  ;;  %v4941_v9 = vld [vmem:[%s4927_s11 + $0x20] sm:$0xff]  ;;  %v321_v10 = vrot.slane %v4936_v6, 1  ;;  %v4953_v15 = vld [vmem:[%s4927_s11 + $0x30] sm:$0xff] }
  0x1f   : > { %6300 = vst [vmem:[#allocation6_spill] sm:$0xff] %v4941_v9  ;;  %v4945_v11 = vld [vmem:[%s4927_s11 + $0x10] sm:$0x3]  ;;  %v322_v12 = vrot.slane %v4941_v9, 1  ;;  %v4950_v14 = vld [vmem:[%s4927_s11 + $0x28] sm:$0x3] }
  0x20   : > { %v319_v13 = vrot.slane %v4945_v11, 1  ;;  %v318_v16 = vsel %vm315_vm1, %v316_v7, %v317_v8  ;;  %v324_v17 = vrot.slane %v4950_v14, 1  ;;  %v4958_v18 = vld [vmem:[%s4927_s11 + $0x38] sm:$0xff]  ;;  %v326_v19 = vrot.slane %v4953_v15, 1  ;;  %v4962_v20 = vld [vmem:[%s4927_s11 + $0x40] sm:$0x3] }
  0x21   : > { %3979 = vmatprep.mubr.msk.f32.mxu1 %vm398_vm2, %v318_v16  ;;  %v323_v21 = vsel %vm315_vm1, %v321_v10, %v322_v12  ;;  %v327_v23 = vrot.slane %v4958_v18, 1  ;;  %v329_v24 = vrot.slane %v4962_v20, 1  ;;  %v4970_v25 = vld [vmem:[%s4927_s11 + $0x48] sm:$0xff]  ;;  %v4973_v26 = vld [vmem:[%s4927_s11 + $0x50] sm:$0xff]  ;;  %v4976_v27 = vld [vmem:[%s4927_s11 + $0x58] sm:$0x3] }
  0x22   : > { %v320_v22 = vsel %vm315_vm1, %v317_v8, %v319_v13  ;;  %4179 = vmatprep.mubr.msk.f32.mxu0 %vm398_vm2, %v323_v21  ;;  %v325_v28 = vsel %vm315_vm1, %v322_v12, %v324_v17  ;;  %v331_v29 = vrot.slane %v4970_v25, 1  ;;  %v332_v30 = vrot.slane %v4973_v26, 1  ;;  %v4984_v31 = vld [vmem:[%s4927_s11 + $0x60] sm:$0xff]  ;;  %v4987_v32 = vld [vmem:[%s4927_s11 + $0x68] sm:$0xff]  ;;  %v5018_v41 = vld [vmem:[%s4927_s11 + $0x70] sm:$0x3] }
  0x23   : > { %3980 = vmatmul.mubr.msk.f32.vlgmr.msra.gmra.mrb[0].mxu1 %vm398_vm2, %v320_v22  ;;  %4180 = vmatmul.mubr.msk.f32.vlgmr.msra.gmra.mrb[0].mxu0 %vm398_vm2, %v325_v28  ;;  %v4997_v34 = vsel %vm315_vm1, %v326_v19, %v327_v23  ;;  %v5007_v36 = vsel %vm315_vm1, %v327_v23, %v329_v24  ;;  %v334_v37 = vrot.slane %v4976_v27, 1  ;;  %v336_v39 = vrot.slane %v4984_v31, 1  ;;  %v5024_v42 = vld [vmem:[%s4927_s11 + $0x78] sm:$0xff]  ;;  %v5027_v43 = vld [vmem:[%s4927_s11 + $0x80] sm:$0xff]  ;;  %v5047_v49 = vld [vmem:[%s4927_s11 + $0x88] sm:$0x3] }
  0x24   : > { %4028 = vmatpush3.msk.msra.mxu1 %vm463_vm0, %v266_v2  ;;  %6301 = vst [vmem:[#allocation7_spill] sm:$0xff] %v4997_v34  ;;  %4228 = vmatpush3.msk.msra.mxu0 %vm463_vm0, %v3539_v3  ;;  %6302 = vst [vmem:[#allocation8_spill] sm:$0xff] %v5007_v36  ;;  %v5013_v38 = vsel %vm315_vm1, %v331_v29, %v332_v30  ;;  %v337_v40 = vrot.slane %v4987_v32, 1  ;;  %v339_v45 = vrot.slane %v5018_v41, 1  ;;  %v341_v47 = vrot.slane %v5024_v42, 1  ;;  %v5052_v50 = vld [vmem:[%s4927_s11 + $0x90] sm:$0xff] }
  0x25   : > { %3982 = vmatprep.mubr.msk.f32.mxu1 %vm398_vm2, %v323_v21  ;;  %4182 = vmatprep.mubr.msk.f32.mxu0 %vm398_vm2, %v4997_v34  ;;  %6303 = vst [vmem:[#allocation9_spill] sm:$0xff] %v5013_v38  ;;  %v5038_v44 = vsel %vm315_vm1, %v332_v30, %v334_v37  ;;  %v342_v48 = vrot.slane %v5027_v43, 1  ;;  %v5055_v51 = vld [vmem:[%s4927_s11 + $0x98] sm:$0xff]  ;;  %v344_v53 = vrot.slane %v5047_v49, 1  ;;  %v346_v55 = vrot.slane %v5052_v50, 1  ;;  %v5078_v58 = vld [vmem:[%s4927_s11 + $0xa8] sm:$0xff] }
  0x26   : > { %4277 = vmatprep.subr.msk.mxu0 %vm463_vm0, %v4992_v33  ;;  %4077 = vmatprep.subr.msk.mxu1 %vm463_vm0, %v5002_v35  ;;  %6304 = vst [vmem:[#allocation10_spill] sm:$0xff] %v5038_v44  ;;  %v5042_v46 = vsel %vm315_vm1, %v336_v39, %v337_v40  ;;  %v5064_v52 = vsel %vm315_vm1, %v337_v40, %v339_v45  ;;  %v347_v56 = vrot.slane %v5055_v51, 1  ;;  %v5073_v57 = vld [vmem:[%s4927_s11 + $0xa0] sm:$0x3]  ;;  %v5081_v59 = vld [vmem:[%s4927_s11 + $0xb0] sm:$0xff]  ;;  %v351_v63 = vrot.slane %v5078_v58, 1 }
  0x27   : > { %3983 = vmatmul.mubr.msk.f32.gmra.mrb[2].mxu1 %vm398_vm2, %v325_v28  ;;  %4183 = vmatmul.mubr.msk.f32.gmra.mrb[2].mxu0 %vm398_vm2, %v5007_v36  ;;  %6305 = vst [vmem:[#allocation11_spill] sm:$0xff] %v5042_v46  ;;  %6306 = vst [vmem:[#allocation12_spill] sm:$0xff] %v5064_v52  ;;  %v5068_v54 = vsel %vm315_vm1, %v341_v47, %v342_v48  ;;  %v5090_v60 = vsel %vm315_vm1, %v342_v48, %v344_v53  ;;  %v349_v61 = vrot.slane %v5073_v57, 1  ;;  %v5099_v2 = vld [vmem:[%s4927_s11 + $0xb8] sm:$0x3]  ;;  %v5104_v3 = vld [vmem:[%s4927_s11 + $0xc0] sm:$0xff] }
  0x28   : > { %3985 = vmatprep.mubr.msk.f32.mxu1 %vm398_vm2, %v4997_v34  ;;  %4185 = vmatprep.mubr.msk.f32.mxu0 %vm398_vm2, %v5013_v38  ;;  %6307 = vst [vmem:[#allocation13_spill] sm:$0xff] %v5068_v54  ;;  %6308 = vst [vmem:[#allocation14_spill] sm:$0xff] %v5090_v60  ;;  %v5094_v62 = vsel %vm315_vm1, %v346_v55, %v347_v56  ;;  %v352_v0 = vrot.slane %v5081_v59, 1  ;;  %v5107_v7 = vld [vmem:[%s4927_s11 + $0xc8] sm:$0xff]  ;;  %v354_v10 = vrot.slane %v5099_v2, 1  ;;  %v356_v13 = vrot.slane %v5104_v3, 1 }
  0x29   : > { %6309 = vst [vmem:[#allocation15_spill] sm:$0xff] %v5094_v62  ;;  %v5116_v8 = vsel %vm315_vm1, %v347_v56, %v349_v61  ;;  %v357_v16 = vrot.slane %v5107_v7, 1  ;;  %v5125_v17 = vld [vmem:[%s4927_s11 + $0xd0] sm:$0x3]  ;;  %v990_v23 = vrot.slane %v4936_v6, 2  ;;  %v991_v24 = vrot.slane %v4941_v9, 2 }
  0x2a   : > { %6310 = vst [vmem:[#allocation16_spill] sm:$0xff] %v5116_v8  ;;  %v5120_v12 = vsel %vm315_vm1, %v351_v63, %v352_v0  ;;  %v5136_v19 = vsel %vm315_vm1, %v352_v0, %v354_v10  ;;  %v359_v21 = vrot.slane %v5125_v17, 1  ;;  %v5145_v28 = vld [vmem:[%s4927_s11 + $0xd8] sm:$0xff]  ;;  %v5148_v29 = vld [vmem:[%s4927_s11 + $0xe0] sm:$0xff]  ;;  %v993_v30 = vrot.slane %v4950_v14, 2  ;;  %v5173_v53 = vld [vmem:[%s4927_s11 + $0xf0] sm:$0xff] }
  0x2b   : > { %3986 = vmatmul.mubr.msk.f32.gmra.mrb[4].mxu1 %vm398_vm2, %v5007_v36  ;;  %4186 = vmatmul.mubr.msk.f32.gmra.mrb[4].mxu0 %vm398_vm2, %v5038_v44  ;;  %6311 = vst [vmem:[#allocation17_spill] sm:$0xff] %v5120_v12  ;;  %6312 = vst [vmem:[#allocation18_spill] sm:$0xff] %v5136_v19  ;;  %v5140_v22 = vsel %vm315_vm1, %v356_v13, %v357_v16  ;;  %v361_v39 = vrot.slane %v5145_v28, 1  ;;  %v362_v40 = vrot.slane %v5148_v29, 1  ;;  %v5165_v45 = vld [vmem:[%s4927_s11 + $0xe8] sm:$0x3] }
  0x2c   : > { %3988 = vmatprep.mubr.msk.f32.mxu1 %vm398_vm2, %v5013_v38  ;;  %4188 = vmatprep.mubr.msk.f32.mxu0 %vm398_vm2, %v5042_v46  ;;  %6313 = vst [vmem:[#allocation19_spill] sm:$0xff] %v5140_v22  ;;  %v5160_v37 = vsel %vm315_vm1, %v357_v16, %v359_v21  ;;  %v5168_v47 = vsel %vm984_vm3, %v990_v23, %v991_v24  ;;  %v995_v48 = vrot.slane %v4953_v15, 2  ;;  %v996_v14 = vrot.slane %v4958_v18, 2  ;;  %v5176_v55 = vld [vmem:[%s4927_s11 + $0xf8] sm:$0xff]  ;;  %v5197_v16 = vld [vmem:[%s4927_s11 + $0x100] sm:$0x3] }
  0x2d   : > { %6314 = vst [vmem:[#allocation20_spill] sm:$0xff] %v5160_v37  ;;  %v364_v56 = vrot.slane %v5165_v45, 1  ;;  %v998_v61 = vrot.slane %v4962_v20, 2  ;;  %v5189_v63 = vsel %vm984_vm3, %v991_v24, %v993_v30  ;;  %v5192_v0 = vsel %vm315_vm1, %v361_v39, %v362_v40  ;;  %v5208_v24 = vld [vmem:[%s4927_s11 + $0x110] sm:$0xff]  ;;  %v5215_v30 = vld [vmem:[%s6221_s1 + $0x1c] sm:$0xf] }
  0x2e   : > { %6315 = vst [vmem:[#allocation21_spill] sm:$0xff] %v5192_v0  ;;  %v366_v10 = vrot.slane %v5173_v53, 1  ;;  %v367_v13 = vrot.slane %v5176_v55, 1  ;;  %v5200_v21 = vsel %vm984_vm3, %v995_v48, %v996_v14  ;;  %v1000_v20 = vrot.slane %v4970_v25, 2  ;;  %v5311_v36 = vld [vmem:[%s4927_s11 + $0x148] sm:$0x3] }
  0x2f   : > { %3989 = vmatmul.mubr.msk.f32.gmra.mrb[6].mxu1 %vm398_vm2, %v5038_v44  ;;  %4189 = vmatmul.mubr.msk.f32.gmra.mrb[6].mxu0 %vm398_vm2, %v5064_v52  ;;  %v1001_v23 = vrot.slane %v4973_v26, 2  ;;  %v5222_v39 = vsel %vm315_vm1, %v362_v40, %v364_v56  ;;  %v5225_v48 = vsel %vm984_vm3, %v996_v14, %v998_v61  ;;  %v372_v40 = vrot.slane %v5208_v24, 1  ;;  %v5239_v56 = vld [vmem:[%s4927_s11 + $0x118] sm:$0x3]  ;;  %s3249_s19 = sshll.u32 %s192_s18, 4  ;;  %s4745_s29 = sshll.u32 %s4821_s28, 4  ;;  %s6175_s19 = int_to_ptr.vmem [resolvable:$true] %s3249_s19  ;;  %s4746_s29 = int_to_ptr.vmem [resolvable:$false] %s4745_s29 }
  0x30   : > { %3991 = vmatprep.mubr.msk.f32.mxu1 %vm398_vm2, %v5042_v46  ;;  %4191 = vmatprep.mubr.msk.f32.mxu0 %vm398_vm2, %v5068_v54  ;;  %6316 = vst [vmem:[#allocation22_spill] sm:$0xff] %v5222_v39  ;;  %6317 = vst [vmem:[#allocation23_spill] sm:$0xff] %v5225_v48  ;;  %v1005_v61 = vrot.slane %v4984_v31, 2  ;;  %v5284_v46 = vld [vmem:[%s4927_s11 + $0x138] sm:$0xff]  ;;  %v1013_v44 = vrot.slane %v5047_v49, 2  ;;  %v1018_v34 = vrot.slane %v5073_v57, 2  ;;  %p4748_p1 = scmp.lt.s32.totalorder %s6175_s19, %s4746_s29 }
  0x31   : > { %v5242_v14 = vsel %vm984_vm3, %v1000_v20, %v1001_v23  ;;  %v374_v20 = vrot.slane %v5239_v56, 1  ;;  %v381_v38 = vrot.slane %v5284_v46, 1  ;;  %v1020_v57 = vrot.slane %v5078_v58, 2  ;;  %s4747_s30 = scalar_lea.vmem %s4746_s29, 64 }
  0x32   : > { %6319 = vst [vmem:[#allocation25_spill] sm:$0xff] %v5242_v14 }
  0x33   : > { %3992 = vmatmul.mubr.msk.f32.gmra.mrb[8].mxu1 %vm398_vm2, %v5064_v52  ;;  %4192 = vmatmul.mubr.msk.f32.gmra.mrb[8].mxu0 %vm398_vm2, %v5090_v60  ;;  %v5276_v52 = vld [vmem:[%s4927_s11 + $0x130] sm:$0x3] }
  0x34   : > { %3994 = vmatprep.mubr.msk.f32.mxu1 %vm398_vm2, %v5068_v54  ;;  %4194 = vmatprep.mubr.msk.f32.mxu0 %vm398_vm2, %v5094_v62 }
  0x37   : > { %3995 = vmatmul.mubr.msk.f32.gmra.mrb[10].mxu1 %vm398_vm2, %v5090_v60  ;;  %4195 = vmatmul.mubr.msk.f32.gmra.mrb[10].mxu0 %vm398_vm2, %v5116_v8 }
  0x38   : > { %3997 = vmatprep.mubr.msk.f32.mxu1 %vm398_vm2, %v5094_v62  ;;  %4197 = vmatprep.mubr.msk.f32.mxu0 %vm398_vm2, %v5120_v12  ;;  %v1008_v62 = vrot.slane %v5018_v41, 2  ;;  %v1010_v41 = vrot.slane %v5024_v42, 2 }
  0x3b   : > { %3998 = vmatmul.mubr.msk.f32.gmra.mrb[12].mxu1 %vm398_vm2, %v5116_v8  ;;  %4198 = vmatmul.mubr.msk.f32.gmra.mrb[12].mxu0 %vm398_vm2, %v5136_v19  ;;  %v5247_v8 = vld [vmem:[%s4927_s11 + $0x120] sm:$0xff] }
  0x3c   : > { %4000 = vmatprep.mubr.msk.f32.mxu1 %vm398_vm2, %v5120_v12  ;;  %4200 = vmatprep.mubr.msk.f32.mxu0 %vm398_vm2, %v5140_v22  ;;  %v1003_v12 = vrot.slane %v4976_v27, 2  ;;  %v376_v54 = vrot.slane %v5247_v8, 1 }
  0x3e   : > { %v5268_v60 = vsel %vm984_vm3, %v1001_v23, %v1003_v12  ;;  %v5287_v12 = vld [vmem:[%s4927_s11 + $0x140] sm:$0xff] }
  0x3f   : > { %4001 = vmatmul.mubr.msk.f32.gmra.mrb[14].mxu1 %vm398_vm2, %v5136_v19  ;;  %4201 = vmatmul.mubr.msk.f32.gmra.mrb[14].mxu0 %vm398_vm2, %v5160_v37  ;;  %v5233_v19 = vsel %vm315_vm1, %v366_v10, %v367_v13  ;;  %v5250_v10 = vld [vmem:[%s4927_s11 + $0x128] sm:$0xff]  ;;  %6321 = vst [vmem:[#allocation27_spill] sm:$0xff] %v5268_v60 }
  0x40   : > { %4003 = vmatprep.mubr.msk.f32.mxu1 %vm398_vm2, %v5140_v22  ;;  %4229 = vmatprep.mubr.msk.f32.mxu0 %vm398_vm2, %v5168_v47  ;;  %v5205_v22 = vld [vmem:[%s4927_s11 + $0x108] sm:$0xff]  ;;  %6318 = vst [vmem:[#allocation24_spill] sm:$0xff] %v5233_v19 }
  0x43   : > { %4004 = vmatmul.mubr.msk.f32.gmra.mrb[16].mxu1 %vm398_vm2, %v5160_v37  ;;  %4230 = vmatmul.mubr.msk.f32.vlgmr.msra.gmra.mrb[0].mxu0 %vm398_vm2, %v5189_v63  ;;  %v369_v37 = vrot.slane %v5197_v16, 1 }
  0x44   : > { %4006 = vmatprep.mubr.msk.f32.mxu1 %vm398_vm2, %v5192_v0  ;;  %4278 = vmatpush3.msk.msra.mxu0 %vm463_vm0, %v4992_v33  ;;  %v371_v0 = vrot.slane %v5205_v22, 1  ;;  %v1006_v33 = vrot.slane %v4987_v32, 2 }
  0x45   : > { %4232 = vmatprep.mubr.msk.f32.mxu0 %vm398_vm2, %v5200_v21  ;;  %4327 = vmatprep.subr.msk.mxu0 %vm463_vm0, %v5215_v30  ;;  %v5261_v27 = vsel %vm315_vm1, %v367_v13, %v369_v37  ;;  %v1011_v13 = vrot.slane %v5027_v43, 2 }
  0x46   : > { %6320 = vst [vmem:[#allocation26_spill] sm:$0xff] %v5261_v27  ;;  %v5279_v37 = vsel %vm984_vm3, %v1005_v61, %v1006_v33  ;;  %v5299_v23 = vsel %vm984_vm3, %v1006_v33, %v1008_v62  ;;  %v379_v61 = vrot.slane %v5276_v52, 1  ;;  %v1015_v62 = vrot.slane %v5052_v50, 2 }
  0x47   : > { %4007 = vmatmul.mubr.msk.f32.gmra.mrb[18].mxu1 %vm398_vm2, %v5222_v39  ;;  %4233 = vmatmul.mubr.msk.f32.gmra.mrb[2].mxu0 %vm398_vm2, %v5225_v48  ;;  %v5271_v39 = vsel %vm315_vm1, %v371_v0, %v372_v40  ;;  %6323 = vst [vmem:[#allocation29_spill] sm:$0xff] %v5279_v37  ;;  %v5296_v0 = vsel %vm315_vm1, %v372_v40, %v374_v20  ;;  %6325 = vst [vmem:[#allocation31_spill] sm:$0xff] %v5299_v23  ;;  %v1016_v33 = vrot.slane %v5055_v51, 2  ;;  %v5319_v20 = vld [vmem:[%s4927_s11 + $0x150] sm:$0xff]  ;;  %v5381_v48 = vld [vmem:[%s4927_s11 + $0x178] sm:$0x3] }
  0x48   : > { %4009 = vmatprep.mubr.msk.f32.mxu1 %vm398_vm2, %v5233_v19  ;;  %4235 = vmatprep.mubr.msk.f32.mxu0 %vm398_vm2, %v5242_v14  ;;  %6322 = vst [vmem:[#allocation28_spill] sm:$0xff] %v5271_v39  ;;  %v377_v19 = vrot.slane %v5250_v10, 1  ;;  %6324 = vst [vmem:[#allocation30_spill] sm:$0xff] %v5296_v0  ;;  %v5314_v40 = vsel %vm984_vm3, %v1010_v41, %v1011_v13  ;;  %v384_v41 = vrot.slane %v5311_v36, 1 }
  0x49   : > { %6327 = vst [vmem:[#allocation33_spill] sm:$0xff] %v5314_v40 }
  0x4a   : > { %v5331_v49 = vsel %vm315_vm1, %v377_v19, %v379_v61  ;;  %v1021_v61 = vrot.slane %v5081_v59, 2 }
  0x4b   : > { %4010 = vmatmul.mubr.msk.f32.gmra.mrb[20].mxu1 %vm398_vm2, %v5261_v27  ;;  %4236 = vmatmul.mubr.msk.f32.gmra.mrb[4].mxu0 %vm398_vm2, %v5268_v60  ;;  %v5305_v27 = vsel %vm315_vm1, %v376_v54, %v377_v19  ;;  %v5322_v54 = vld [vmem:[%s4927_s11 + $0x158] sm:$0xff]  ;;  %6328 = vst [vmem:[#allocation34_spill] sm:$0xff] %v5331_v49  ;;  %v5346_v60 = vld [vmem:[%s4927_s11 + $0x160] sm:$0x3]  ;;  %v5349_v19 = vsel %vm984_vm3, %v1015_v62, %v1016_v33 }
  0x4c   : > { %4012 = vmatprep.mubr.msk.f32.mxu1 %vm398_vm2, %v5271_v39  ;;  %4238 = vmatprep.mubr.msk.f32.mxu0 %vm398_vm2, %v5279_v37  ;;  %6326 = vst [vmem:[#allocation32_spill] sm:$0xff] %v5305_v27  ;;  %v382_v39 = vrot.slane %v5287_v12, 1  ;;  %v5338_v37 = vsel %vm984_vm3, %v1011_v13, %v1013_v44  ;;  %v5357_v44 = vld [vmem:[%s4927_s11 + $0x170] sm:$0xff]  ;;  %v5369_v13 = vsel %vm984_vm3, %v1016_v33, %v1018_v34  ;;  %v389_v62 = vrot.slane %v5346_v60, 1 }
  0x4d   : > { %6329 = vst [vmem:[#allocation35_spill] sm:$0xff] %v5338_v37  ;;  %6331 = vst [vmem:[#allocation37_spill] sm:$0xff] %v5357_v44  ;;  %v1025_v34 = vrot.slane %v5104_v3, 2  ;;  %v1026_v33 = vrot.slane %v5107_v7, 2 }
  0x4e   : > { %6333 = vst [vmem:[#allocation39_spill] sm:$0xff] %v5369_v13 }
  0x4f   : > { %4013 = vmatmul.mubr.msk.f32.gmra.mrb[22].mxu1 %vm398_vm2, %v5296_v0  ;;  %4239 = vmatmul.mubr.msk.f32.gmra.mrb[6].mxu0 %vm398_vm2, %v5299_v23  ;;  %v5341_v0 = vsel %vm315_vm1, %v381_v38, %v382_v39  ;;  %v386_v23 = vrot.slane %v5319_v20, 1  ;;  %v5366_v38 = vsel %vm315_vm1, %v382_v39, %v384_v41  ;;  %v5384_v39 = vsel %vm984_vm3, %v1020_v57, %v1021_v61 }
  0x50   : > { %4015 = vmatprep.mubr.msk.f32.mxu1 %vm398_vm2, %v5305_v27  ;;  %4241 = vmatprep.mubr.msk.f32.mxu0 %vm398_vm2, %v5314_v40  ;;  %6330 = vst [vmem:[#allocation36_spill] sm:$0xff] %v5341_v0  ;;  %v387_v27 = vrot.slane %v5322_v54, 1  ;;  %v5354_v40 = vld [vmem:[%s4927_s11 + $0x168] sm:$0xff]  ;;  %6332 = vst [vmem:[#allocation38_spill] sm:$0xff] %v5366_v38 }
  0x52   : > { %v5375_v14 = vsel %vm315_vm1, %v386_v23, %v387_v27  ;;  %v394_v23 = vrot.slane %v5381_v48, 1 }
  0x53   : > { %4016 = vmatmul.mubr.msk.f32.gmra.mrb[24].mxu1 %vm398_vm2, %v5331_v49  ;;  %4242 = vmatmul.mubr.msk.f32.gmra.mrb[8].mxu0 %vm398_vm2, %v5338_v37  ;;  %6334 = vst [vmem:[#allocation40_spill] sm:$0xff] %v5375_v14  ;;  %v1023_v49 = vrot.slane %v5099_v2, 2  ;;  %v391_v37 = vrot.slane %v5354_v40, 1  ;;  %v5395_v2 = vsel %vm315_vm1, %v387_v27, %v389_v62  ;;  %v1031_v27 = vrot.slane %v5148_v29, 2 }
  0x54   : > { %4018 = vmatprep.mubr.msk.f32.mxu1 %vm398_vm2, %v5341_v0  ;;  %4244 = vmatprep.mubr.msk.f32.mxu0 %vm398_vm2, %v5349_v19  ;;  %v392_v0 = vrot.slane %v5357_v44, 1  ;;  %6335 = vst [vmem:[#allocation41_spill] sm:$0xff] %v5395_v2  ;;  %v1035_v62 = vrot.slane %v5173_v53, 2 }
  0x55   : > { %v5401_v41 = vsel %vm984_vm3, %v1021_v61, %v1023_v49  ;;  %v1033_v49 = vrot.slane %v5165_v45, 2 }
  0x56   : > { %v5404_v57 = vsel %vm315_vm1, %v391_v37, %v392_v0  ;;  %v5419_v37 = vsel %vm315_vm1, %v392_v0, %v394_v23  ;;  %v5454_v23 = vld [vmem:[%s6221_s1 + $0xc] sm:$0xf] }
  0x57   : > { %4019 = vmatmul.mubr.msk.f32.gmra.mrb[26].mxu1 %vm398_vm2, %v5366_v38  ;;  %4245 = vmatmul.mubr.msk.f32.gmra.mrb[10].mxu0 %vm398_vm2, %v5369_v13  ;;  %6336 = vst [vmem:[#allocation42_spill] sm:$0xff] %v5404_v57  ;;  %v1028_v38 = vrot.slane %v5125_v17, 2  ;;  %v5408_v13 = vsel %vm984_vm3, %v1025_v34, %v1026_v33  ;;  %6337 = vst [vmem:[#allocation43_spill] sm:$0xff] %v5419_v37  ;;  %v1036_v34 = vrot.slane %v5176_v55, 2 }
  0x58   : > { %4021 = vmatprep.mubr.msk.f32.mxu1 %vm398_vm2, %v5375_v14  ;;  %4247 = vmatprep.mubr.msk.f32.mxu0 %vm398_vm2, %v5384_v39  ;;  %v1030_v14 = vrot.slane %v5145_v28, 2  ;;  %v5441_v45 = vsel %vm984_vm3, %v1031_v27, %v1033_v49 }
  0x59   : > { %v5424_v17 = vsel %vm984_vm3, %v1026_v33, %v1028_v38  ;;  %v5445_v0 = vsel %vm984_vm3, %v1035_v62, %v1036_v34  ;;  %v1040_v38 = vrot.slane %v5205_v22, 2  ;;  %v1041_v33 = vrot.slane %v5208_v24, 2 }
  0x5a   : > { %v5428_v61 = vsel %vm984_vm3, %v1030_v14, %v1031_v27  ;;  %v1038_v14 = vrot.slane %v5197_v16, 2  ;;  %v1043_v27 = vrot.slane %v5239_v56, 2  ;;  %v1045_v62 = vrot.slane %v5247_v8, 2 }
  0x5b   : > { %4022 = vmatmul.mubr.msk.f32.gmra.mrb[28].mxu1 %vm398_vm2, %v5395_v2  ;;  %4248 = vmatmul.mubr.msk.f32.gmra.mrb[12].mxu0 %vm398_vm2, %v5401_v41  ;;  %v5469_v49 = vsel %vm984_vm3, %v1040_v38, %v1041_v33  ;;  %v1050_v38 = vrot.slane %v5284_v46, 2  ;;  %v1061_v2 = vrot.slane %v5357_v44, 2 }
  0x5c   : > { %4024 = vmatprep.mubr.msk.f32.mxu1 %vm398_vm2, %v5404_v57  ;;  %4250 = vmatprep.mubr.msk.f32.mxu0 %vm398_vm2, %v5408_v13  ;;  %v5465_v16 = vsel %vm984_vm3, %v1036_v34, %v1038_v14  ;;  %6338 = vst [vmem:[#allocation44_spill] sm:$0xff] %v5469_v49  ;;  %v5484_v56 = vsel %vm984_vm3, %v1041_v33, %v1043_v27  ;;  %v1048_v34 = vrot.slane %v5276_v52, 2  ;;  %v1053_v33 = vrot.slane %v5311_v36, 2 }
  0x5d   : > { %v1056_v57 = vrot.slane %v5322_v54, 2 }
  0x5f   : > { %4025 = vmatmul.mubr.msk.f32.gmra.mrb[30].mxu1 %vm398_vm2, %v5419_v37  ;;  %4251 = vmatmul.mubr.msk.f32.gmra.mrb[14].mxu0 %vm398_vm2, %v5424_v17  ;;  %v1051_v37 = vrot.slane %v5287_v12, 2 }
  0x60   : > { %4029 = vmatprep.mubr.msk.f32.mxu1 %vm398_vm2, %v4930_v4  ;;  %4253 = vmatprep.mubr.msk.f32.mxu0 %vm398_vm2, %v5428_v61 }
  0x61   : > { %v5505_v27 = vsel %vm984_vm3, %v1050_v38, %v1051_v37  ;;  %v5518_v36 = vsel %vm984_vm3, %v1051_v37, %v1053_v33  ;;  %v1060_v38 = vrot.slane %v5354_v40, 2  ;;  %v1063_v37 = vrot.slane %v5381_v48, 2 }
  0x62   : > { %6340 = vst [vmem:[#allocation46_spill] sm:$0xff] %v5505_v27  ;;  %6341 = vst [vmem:[#allocation47_spill] sm:$0xff] %v5518_v36 }
  0x63   : > { %4030 = vmatmul.mubr.msk.f32.vlgmr.msra.gmra.mrb[0].mxu1 %vm398_vm2, %v4933_v5  ;;  %4254 = vmatmul.mubr.msk.f32.gmra.mrb[16].mxu0 %vm398_vm2, %v5441_v45  ;;  %v5545_v33 = vsel %vm984_vm3, %v1060_v38, %v1061_v2  ;;  %v5561_v48 = vsel %vm984_vm3, %v1061_v2, %v1063_v37  ;;  %v986_v38 = vrot.slane %v4933_v5, 2  ;;  %v988_v37 = vrot.slane %v4945_v11, 2  ;;  %v6348_v5 = vld [vmem:[#allocation23_spill] sm:$0xff]  ;;  %v6349_v11 = vld [vmem:[#allocation25_spill] sm:$0xff] }
  0x64   : > { %4078 = vmatpush3.msk.msra.mxu1 %vm463_vm0, %v5002_v35  ;;  %4032 = vmatprep.mubr.msk.f32.mxu1 %vm398_vm2, %v4936_v6  ;;  %v1046_v35 = vrot.slane %v5250_v10, 2  ;;  %v5532_v6 = vld [vmem:[%s4927_s11 + $0x188] sm:$0xff]  ;;  %6344 = vst [vmem:[#allocation50_spill] sm:$0xff] %v5545_v33  ;;  %6345 = vst [vmem:[#allocation51_spill] sm:$0xff] %v5561_v48 }
  0x65   : > { %4256 = vmatprep.mubr.msk.f32.mxu0 %vm398_vm2, %v5445_v0  ;;  %4127 = vmatprep.subr.msk.mxu1 %vm463_vm0, %v5454_v23 }
  0x66   : > { %v5488_v14 = vsel %vm984_vm3, %v1045_v62, %v1046_v35  ;;  %v5501_v52 = vsel %vm984_vm3, %v1046_v35, %v1048_v34  ;;  %v1055_v62 = vrot.slane %v5319_v20, 2  ;;  %v1058_v35 = vrot.slane %v5346_v60, 2 }
  0x67   : > { %4033 = vmatmul.mubr.msk.f32.gmra.mrb[2].mxu1 %vm398_vm2, %v4941_v9  ;;  %4257 = vmatmul.mubr.msk.f32.gmra.mrb[18].mxu0 %vm398_vm2, %v5465_v16  ;;  %6339 = vst [vmem:[#allocation45_spill] sm:$0xff] %v5501_v52  ;;  %v5529_v9 = vld [vmem:[%s4927_s11 + $0x180] sm:$0xff] }
  0x68   : > { %4035 = vmatprep.mubr.msk.f32.mxu1 %vm398_vm2, %v4953_v15  ;;  %4259 = vmatprep.mubr.msk.f32.mxu0 %vm398_vm2, %v5469_v49  ;;  %v5522_v34 = vsel %vm984_vm3, %v1055_v62, %v1056_v57  ;;  %v5541_v60 = vsel %vm984_vm3, %v1056_v57, %v1058_v35  ;;  %v1931_v62 = vrot.slane %v5529_v9, 2 }
  0x69   : > { %6342 = vst [vmem:[#allocation48_spill] sm:$0xff] %v5522_v34  ;;  %6343 = vst [vmem:[#allocation49_spill] sm:$0xff] %v5541_v60 }
  0x6b   : > { %4036 = vmatmul.mubr.msk.f32.gmra.mrb[4].mxu1 %vm398_vm2, %v4958_v18  ;;  %4260 = vmatmul.mubr.msk.f32.gmra.mrb[20].mxu0 %vm398_vm2, %v5484_v56 }
  0x6c   : > { %4038 = vmatprep.mubr.msk.f32.mxu1 %vm398_vm2, %v4970_v25  ;;  %4262 = vmatprep.mubr.msk.f32.mxu0 %vm398_vm2, %v5488_v14 }
  0x6f   : > { %4039 = vmatmul.mubr.msk.f32.gmra.mrb[6].mxu1 %vm398_vm2, %v4973_v26  ;;  %4263 = vmatmul.mubr.msk.f32.gmra.mrb[22].mxu0 %vm398_vm2, %v5501_v52  ;;  %v5550_v52 = vld [vmem:[%s4927_s11 + $0x190] sm:$0x3] }
  0x70   : > { %4041 = vmatprep.mubr.msk.f32.mxu1 %vm398_vm2, %v4984_v31  ;;  %4265 = vmatprep.mubr.msk.f32.mxu0 %vm398_vm2, %v5505_v27  ;;  %v1932_v27 = vrot.slane %v5532_v6, 2  ;;  %v1934_v57 = vrot.slane %v5550_v52, 2 }
  0x72   : > { %v5565_v35 = vsel %vm984_vm3, %v1931_v62, %v1932_v27  ;;  %v5576_v2 = vsel %vm984_vm3, %v1932_v27, %v1934_v57  ;;  %v5591_v27 = vld [vmem:[%s6221_s1 + $0x20] sm:$0xf]  ;;  %v6353_v57 = vld [vmem:[#allocation33_spill] sm:$0xff] }
  0x73   : > { %4042 = vmatmul.mubr.msk.f32.gmra.mrb[8].mxu1 %vm398_vm2, %v4987_v32  ;;  %4266 = vmatmul.mubr.msk.f32.gmra.mrb[24].mxu0 %vm398_vm2, %v5518_v36  ;;  %6346 = vst [vmem:[#allocation52_spill] sm:$0xff] %v5565_v35  ;;  %6347 = vst [vmem:[#allocation53_spill] sm:$0xff] %v5576_v2 }
  0x74   : > { %4044 = vmatprep.mubr.msk.f32.mxu1 %vm398_vm2, %v5024_v42  ;;  %4268 = vmatprep.mubr.msk.f32.mxu0 %vm398_vm2, %v5522_v34 }
  0x77   : > { %4045 = vmatmul.mubr.msk.f32.gmra.mrb[10].mxu1 %vm398_vm2, %v5027_v43  ;;  %4269 = vmatmul.mubr.msk.f32.gmra.mrb[26].mxu0 %vm398_vm2, %v5541_v60 }
  0x78   : > { %4047 = vmatprep.mubr.msk.f32.mxu1 %vm398_vm2, %v5052_v50  ;;  %4271 = vmatprep.mubr.msk.f32.mxu0 %vm398_vm2, %v5545_v33 }
  0x7b   : > { %4048 = vmatmul.mubr.msk.f32.gmra.mrb[12].mxu1 %vm398_vm2, %v5055_v51  ;;  %4272 = vmatmul.mubr.msk.f32.gmra.mrb[28].mxu0 %vm398_vm2, %v5561_v48 }
  0x7c   : > { %4050 = vmatprep.mubr.msk.f32.mxu1 %vm398_vm2, %v5078_v58  ;;  %4274 = vmatprep.mubr.msk.f32.mxu0 %vm398_vm2, %v5565_v35  ;;  %v6358_v35 = vld [vmem:[#allocation9_spill] sm:$0xff] }
  0x7f   : > { %4051 = vmatmul.mubr.msk.f32.gmra.mrb[14].mxu1 %vm398_vm2, %v5081_v59  ;;  %4275 = vmatmul.mubr.msk.f32.gmra.mrb[30].mxu0 %vm398_vm2, %v5576_v2  ;;  %v6357_v2 = vld [vmem:[#allocation8_spill] sm:$0xff] }
  0x80   : > { %4053 = vmatprep.mubr.msk.f32.mxu1 %vm398_vm2, %v5104_v3  ;;  %4279 = vmatprep.mubr.msk.f32.mxu0 %vm398_vm2, %v4953_v15 }
  0x83   : > { %4054 = vmatmul.mubr.msk.f32.gmra.mrb[16].mxu1 %vm398_vm2, %v5107_v7  ;;  %4280 = vmatmul.mubr.msk.f32.vlgmr.msra.gmra.mrb[0].mxu0 %vm398_vm2, %v4958_v18 }
  0x84   : > { %4056 = vmatprep.mubr.msk.f32.mxu1 %vm398_vm2, %v5145_v28  ;;  %4328 = vmatpush3.msk.msra.mxu0 %vm463_vm0, %v5215_v30  ;;  %v985_v30 = vrot.slane %v4930_v4, 2  ;;  %v989_v4 = vsel %vm984_vm3, %v986_v38, %v988_v37  ;;  %v6355_v37 = vld [vmem:[#allocation39_spill] sm:$0xff] }
  0x85   : > { %4282 = vmatprep.mubr.msk.f32.mxu0 %vm398_vm2, %v4970_v25  ;;  %4377 = vmatprep.subr.msk.mxu0 %vm463_vm0, %v5591_v27 }
  0x86   : > { %v987_v62 = vsel %vm984_vm3, %v985_v30, %v986_v38  ;;  %v6354_v30 = vld [vmem:[#allocation35_spill] sm:$0xff] }
  0x87   : > { %4057 = vmatmul.mubr.msk.f32.gmra.mrb[18].mxu1 %vm398_vm2, %v5148_v29  ;;  %4283 = vmatmul.mubr.msk.f32.gmra.mrb[2].mxu0 %vm398_vm2, %v4973_v26  ;;  %v5715_v38 = vld [vmem:[%s4927_s11 + $0x198] sm:$0xff] }
  0x88   : > { %4059 = vmatprep.mubr.msk.f32.mxu1 %vm398_vm2, %v5173_v53  ;;  %4285 = vmatprep.mubr.msk.f32.mxu0 %vm398_vm2, %v4984_v31 }
  0x8b   : > { %4060 = vmatmul.mubr.msk.f32.gmra.mrb[20].mxu1 %vm398_vm2, %v5176_v55  ;;  %4286 = vmatmul.mubr.msk.f32.gmra.mrb[4].mxu0 %vm398_vm2, %v4987_v32 }
  0x8c   : > { %4062 = vmatprep.mubr.msk.f32.mxu1 %vm398_vm2, %v5205_v22  ;;  %4288 = vmatprep.mubr.msk.f32.mxu0 %vm398_vm2, %v5024_v42 }
  0x8f   : > { %4063 = vmatmul.mubr.msk.f32.gmra.mrb[22].mxu1 %vm398_vm2, %v5208_v24  ;;  %4289 = vmatmul.mubr.msk.f32.gmra.mrb[6].mxu0 %vm398_vm2, %v5027_v43 }
  0x90   : > { %4065 = vmatprep.mubr.msk.f32.mxu1 %vm398_vm2, %v5247_v8  ;;  %4291 = vmatprep.mubr.msk.f32.mxu0 %vm398_vm2, %v5052_v50 }
  0x93   : > { %4066 = vmatmul.mubr.msk.f32.gmra.mrb[24].mxu1 %vm398_vm2, %v5250_v10  ;;  %4292 = vmatmul.mubr.msk.f32.gmra.mrb[8].mxu0 %vm398_vm2, %v5055_v51 }
  0x94   : > { %4068 = vmatprep.mubr.msk.f32.mxu1 %vm398_vm2, %v5284_v46  ;;  %4294 = vmatprep.mubr.msk.f32.mxu0 %vm398_vm2, %v5078_v58 }
  0x97   : > { %4069 = vmatmul.mubr.msk.f32.gmra.mrb[26].mxu1 %vm398_vm2, %v5287_v12  ;;  %4295 = vmatmul.mubr.msk.f32.gmra.mrb[10].mxu0 %vm398_vm2, %v5081_v59 }
  0x98   : > { %4071 = vmatprep.mubr.msk.f32.mxu1 %vm398_vm2, %v5319_v20  ;;  %4297 = vmatprep.mubr.msk.f32.mxu0 %vm398_vm2, %v5104_v3 }
  0x9b   : > { %4072 = vmatmul.mubr.msk.f32.gmra.mrb[28].mxu1 %vm398_vm2, %v5322_v54  ;;  %4298 = vmatmul.mubr.msk.f32.gmra.mrb[12].mxu0 %vm398_vm2, %v5107_v7 }
  0x9c   : > { %4074 = vmatprep.mubr.msk.f32.mxu1 %vm398_vm2, %v5354_v40  ;;  %4300 = vmatprep.mubr.msk.f32.mxu0 %vm398_vm2, %v5145_v28 }
  0x9f   : > { %4075 = vmatmul.mubr.msk.f32.gmra.mrb[30].mxu1 %vm398_vm2, %v5357_v44  ;;  %4301 = vmatmul.mubr.msk.f32.gmra.mrb[14].mxu0 %vm398_vm2, %v5148_v29 }
  0xa0   : > { %4079 = vmatprep.mubr.msk.f32.mxu1 %vm398_vm2, %v987_v62  ;;  %4303 = vmatprep.mubr.msk.f32.mxu0 %vm398_vm2, %v5173_v53  ;;  %v5726_v62 = vld [vmem:[%s4927_s11 + $0x1a0] sm:$0xff] }
  0xa3   : > { %4080 = vmatmul.mubr.msk.f32.vlgmr.msra.gmra.mrb[0].mxu1 %vm398_vm2, %v989_v4  ;;  %4304 = vmatmul.mubr.msk.f32.gmra.mrb[16].mxu0 %vm398_vm2, %v5176_v55  ;;  %v6356_v4 = vld [vmem:[#allocation7_spill] sm:$0xff] }
  0xa4   : > { %4128 = vmatpush3.msk.msra.mxu1 %vm463_vm0, %v5454_v23  ;;  %4082 = vmatprep.mubr.msk.f32.mxu1 %vm398_vm2, %v5168_v47  ;;  %v6350_v47 = vld [vmem:[#allocation27_spill] sm:$0xff] }
  0xa5   : > { %4306 = vmatprep.mubr.msk.f32.mxu0 %vm398_vm2, %v5205_v22  ;;  %4427 = vmatprep.subr.msk.mxu1 %vm463_vm0, %v4903_v1  ;;  %v6352_v23 = vld [vmem:[#allocation31_spill] sm:$0xff] }
  0xa7   : > { %4083 = vmatmul.mubr.msk.f32.gmra.mrb[2].mxu1 %vm398_vm2, %v5189_v63  ;;  %4307 = vmatmul.mubr.msk.f32.gmra.mrb[18].mxu0 %vm398_vm2, %v5208_v24  ;;  %v6351_v63 = vld [vmem:[#allocation29_spill] sm:$0xff] }
  0xa8   : > { %4085 = vmatprep.mubr.msk.f32.mxu1 %vm398_vm2, %v5200_v21  ;;  %4309 = vmatprep.mubr.msk.f32.mxu0 %vm398_vm2, %v5247_v8 }
  0xab   : > { %4086 = vmatmul.mubr.msk.f32.gmra.mrb[4].mxu1 %vm398_vm2, %v6348_v5  ;;  %4310 = vmatmul.mubr.msk.f32.gmra.mrb[20].mxu0 %vm398_vm2, %v5250_v10 }
  0xac   : > { %4088 = vmatprep.mubr.msk.f32.mxu1 %vm398_vm2, %v6349_v11  ;;  %4312 = vmatprep.mubr.msk.f32.mxu0 %vm398_vm2, %v5284_v46 }
  0xaf   : > { %4089 = vmatmul.mubr.msk.f32.gmra.mrb[6].mxu1 %vm398_vm2, %v6350_v47  ;;  %4313 = vmatmul.mubr.msk.f32.gmra.mrb[22].mxu0 %vm398_vm2, %v5287_v12 }
  0xb0   : > { %4091 = vmatprep.mubr.msk.f32.mxu1 %vm398_vm2, %v6351_v63  ;;  %4315 = vmatprep.mubr.msk.f32.mxu0 %vm398_vm2, %v5319_v20 }
  0xb3   : > { %4092 = vmatmul.mubr.msk.f32.gmra.mrb[8].mxu1 %vm398_vm2, %v6352_v23  ;;  %4316 = vmatmul.mubr.msk.f32.gmra.mrb[24].mxu0 %vm398_vm2, %v5322_v54 }
  0xb4   : > { %4094 = vmatprep.mubr.msk.f32.mxu1 %vm398_vm2, %v6353_v57  ;;  %4318 = vmatprep.mubr.msk.f32.mxu0 %vm398_vm2, %v5354_v40 }
  0xb7   : > { %4095 = vmatmul.mubr.msk.f32.gmra.mrb[10].mxu1 %vm398_vm2, %v6354_v30  ;;  %4319 = vmatmul.mubr.msk.f32.gmra.mrb[26].mxu0 %vm398_vm2, %v5357_v44  ;;  %v6359_v44 = vld [vmem:[#allocation10_spill] sm:$0xff] }
  0xb8   : > { %4097 = vmatprep.mubr.msk.f32.mxu1 %vm398_vm2, %v5349_v19  ;;  %4321 = vmatprep.mubr.msk.f32.mxu0 %vm398_vm2, %v5529_v9 }
  0xbb   : > { %4098 = vmatmul.mubr.msk.f32.gmra.mrb[12].mxu1 %vm398_vm2, %v6355_v37  ;;  %4322 = vmatmul.mubr.msk.f32.gmra.mrb[28].mxu0 %vm398_vm2, %v5532_v6 }
  0xbc   : > { %4100 = vmatprep.mubr.msk.f32.mxu1 %vm398_vm2, %v5384_v39  ;;  %4324 = vmatprep.mubr.msk.f32.mxu0 %vm398_vm2, %v5715_v38 }
  0xbf   : > { %4101 = vmatmul.mubr.msk.f32.gmra.mrb[14].mxu1 %vm398_vm2, %v5401_v41  ;;  %4325 = vmatmul.mubr.msk.f32.gmra.mrb[30].mxu0 %vm398_vm2, %v5726_v62 }
  0xc0   : > { %4103 = vmatprep.mubr.msk.f32.mxu1 %vm398_vm2, %v5408_v13  ;;  %4329 = vmatprep.mubr.msk.f32.mxu0 %vm398_vm2, %v6356_v4  ;;  %v6360_v4 = vld [vmem:[#allocation11_spill] sm:$0xff] }
  0xc3   : > { %4104 = vmatmul.mubr.msk.f32.gmra.mrb[16].mxu1 %vm398_vm2, %v5424_v17  ;;  %4330 = vmatmul.mubr.msk.f32.vlgmr.msra.gmra.mrb[0].mxu0 %vm398_vm2, %v6357_v2  ;;  %v6361_v2 = vld [vmem:[#allocation12_spill] sm:$0xff] }
  0xc4   : > { %4106 = vmatprep.mubr.msk.f32.mxu1 %vm398_vm2, %v5428_v61  ;;  %4378 = vmatpush3.msk.msra.mxu0 %vm463_vm0, %v5591_v27  ;;  %v6364_v27 = vld [vmem:[#allocation15_spill] sm:$0xff] }
  0xc5   : > { %4332 = vmatprep.mubr.msk.f32.mxu0 %vm398_vm2, %v6358_v35  ;;  %v6362_v35 = vld [vmem:[#allocation13_spill] sm:$0xff] }
  0xc7   : > { %4107 = vmatmul.mubr.msk.f32.gmra.mrb[18].mxu1 %vm398_vm2, %v5441_v45  ;;  %4333 = vmatmul.mubr.msk.f32.gmra.mrb[2].mxu0 %vm398_vm2, %v6359_v44  ;;  %v6363_v44 = vld [vmem:[#allocation14_spill] sm:$0xff] }
  0xc8   : > { %4109 = vmatprep.mubr.msk.f32.mxu1 %vm398_vm2, %v5445_v0  ;;  %4335 = vmatprep.mubr.msk.f32.mxu0 %vm398_vm2, %v6360_v4  ;;  %v6365_v4 = vld [vmem:[#allocation45_spill] sm:$0xff] }
  0xcb   : > { %4110 = vmatmul.mubr.msk.f32.gmra.mrb[20].mxu1 %vm398_vm2, %v5465_v16  ;;  %4336 = vmatmul.mubr.msk.f32.gmra.mrb[4].mxu0 %vm398_vm2, %v6361_v2  ;;  %v6366_v2 = vld [vmem:[#allocation16_spill] sm:$0xff] }
  0xcc   : > { %4112 = vmatprep.mubr.msk.f32.mxu1 %vm398_vm2, %v5469_v49  ;;  %4338 = vmatprep.mubr.msk.f32.mxu0 %vm398_vm2, %v6362_v35  ;;  %v6367_v49 = vld [vmem:[#allocation46_spill] sm:$0xff]  ;;  %v6368_v35 = vld [vmem:[#allocation17_spill] sm:$0xff] }
  0xcf   : > { %4113 = vmatmul.mubr.msk.f32.gmra.mrb[22].mxu1 %vm398_vm2, %v5484_v56  ;;  %4339 = vmatmul.mubr.msk.f32.gmra.mrb[6].mxu0 %vm398_vm2, %v6363_v44  ;;  %v6369_v44 = vld [vmem:[#allocation18_spill] sm:$0xff] }
  0xd0   : > { %4115 = vmatprep.mubr.msk.f32.mxu1 %vm398_vm2, %v5488_v14  ;;  %4341 = vmatprep.mubr.msk.f32.mxu0 %vm398_vm2, %v6364_v27  ;;  %v6370_v27 = vld [vmem:[#allocation19_spill] sm:$0xff] }
  0xd3   : > { %4116 = vmatmul.mubr.msk.f32.gmra.mrb[24].mxu1 %vm398_vm2, %v6365_v4  ;;  %4342 = vmatmul.mubr.msk.f32.gmra.mrb[8].mxu0 %vm398_vm2, %v6366_v2  ;;  %v6371_v2 = vld [vmem:[#allocation20_spill] sm:$0xff] }
  0xd4   : > { %4118 = vmatprep.mubr.msk.f32.mxu1 %vm398_vm2, %v6367_v49  ;;  %4344 = vmatprep.mubr.msk.f32.mxu0 %vm398_vm2, %v6368_v35  ;;  %v6372_v35 = vld [vmem:[#allocation21_spill] sm:$0xff] }
  0xd7   : > { %4119 = vmatmul.mubr.msk.f32.gmra.mrb[26].mxu1 %vm398_vm2, %v5518_v36  ;;  %4345 = vmatmul.mubr.msk.f32.gmra.mrb[10].mxu0 %vm398_vm2, %v6369_v44  ;;  %v6373_v44 = vld [vmem:[#allocation22_spill] sm:$0xff]  ;;  %v5853_v36 = vld [vmem:[%s4927_s11 + $0x1a8] sm:$0x3]  ;;  %s3676_s11 = sshll.u32 %s4811_s15, 5  ;;  %s4741_s15 = scalar_lea.vmem %s6175_s19, 32 }
  0xd8   : > { %4121 = vmatprep.mubr.msk.f32.mxu1 %vm398_vm2, %v5522_v34  ;;  %4347 = vmatprep.mubr.msk.f32.mxu0 %vm398_vm2, %v6370_v27  ;;  %v6374_v34 = vld [vmem:[#allocation5_spill] sm:$0xff]  ;;  %v6375_v27 = vld [vmem:[#allocation24_spill] sm:$0xff]  ;;  %s6173_s26 = scalar_lea.hbm %s6223_s3, %s3676_s11  ;;  %p4742_p12 = scmp.ne.s32.totalorder %s6175_s19, %s4741_s15 }
  0xd9   : > { %p4749_p2 = scmp.lt.s32.totalorder %s4747_s30, %s4741_s15 }
  0xda   : > { %p4743_p13 = pnand %p4742_p12, %p4882_p4 }
  0xdb   : > { %4122 = vmatmul.mubr.msk.f32.gmra.mrb[28].mxu1 %vm398_vm2, %v5541_v60  ;;  %4348 = vmatmul.mubr.msk.f32.gmra.mrb[12].mxu0 %vm398_vm2, %v6371_v2  ;;  %v6376_v60 = vld [vmem:[#allocation6_spill] sm:$0xff]  ;;  %p4750_p3 = por %p4749_p2, %p4748_p1 }
  0xdc   : > { %4124 = vmatprep.mubr.msk.f32.mxu1 %vm398_vm2, %v5545_v33  ;;  %4350 = vmatprep.mubr.msk.f32.mxu0 %vm398_vm2, %v6372_v35  ;;  %v6377_v2 = vld [vmem:[#allocation26_spill] sm:$0xff]  ;;  %v6385_v33 = vld [vmem:[#allocation41_spill] sm:$0xff]  ;;  %p4744_p0 = pneg %p4743_p13 }
  0xde   : > { %p4751_p5 = pnand %p4750_p3, %p4744_p0 }
  0xdf   : > { %4125 = vmatmul.mubr.msk.f32.gmra.mrb[30].mxu1 %vm398_vm2, %v5561_v48  ;;  %4351 = vmatmul.mubr.msk.f32.gmra.mrb[14].mxu0 %vm398_vm2, %v6373_v44  ;;  %v6378_v48 = vld [vmem:[#allocation28_spill] sm:$0xff] }
  0xe0   : > { %4129 = vmatprep.mubr.msk.f32.mxu1 %vm398_vm2, %v6374_v34  ;;  %4353 = vmatprep.mubr.msk.f32.mxu0 %vm398_vm2, %v6375_v27  ;;  %v6379_v34 = vld [vmem:[#allocation30_spill] sm:$0xff] }
  0xe3   : > { %4130 = vmatmul.mubr.msk.f32.vlgmr.msra.gmra.mrb[0].mxu1 %vm398_vm2, %v6376_v60  ;;  %4354 = vmatmul.mubr.msk.f32.gmra.mrb[16].mxu0 %vm398_vm2, %v6377_v2  ;;  %v6380_v60 = vld [vmem:[#allocation32_spill] sm:$0xff] }
  0xe4   : > { %4428 = vmatpush3.msk.msra.mxu1 %vm463_vm0, %v4903_v1  ;;  %4132 = vmatprep.mubr.msk.f32.mxu1 %vm398_vm2, %v4953_v15  ;;  %v6381_v1 = vld [vmem:[#allocation34_spill] sm:$0xff]  ;;  %v6382_v15 = vld [vmem:[#allocation36_spill] sm:$0xff] }
  0xe5   : > { %4356 = vmatprep.mubr.msk.f32.mxu0 %vm398_vm2, %v6378_v48 }
  0xe7   : > { %4133 = vmatmul.mubr.msk.f32.gmra.mrb[2].mxu1 %vm398_vm2, %v4958_v18  ;;  %4357 = vmatmul.mubr.msk.f32.gmra.mrb[18].mxu0 %vm398_vm2, %v6379_v34  ;;  %v6383_v18 = vld [vmem:[#allocation38_spill] sm:$0xff] }
  0xe8   : > { %4135 = vmatprep.mubr.msk.f32.mxu1 %vm398_vm2, %v4970_v25  ;;  %4359 = vmatprep.mubr.msk.f32.mxu0 %vm398_vm2, %v6380_v60  ;;  %v6384_v25 = vld [vmem:[#allocation40_spill] sm:$0xff] }
  0xeb   : > { %4136 = vmatmul.mubr.msk.f32.gmra.mrb[4].mxu1 %vm398_vm2, %v4973_v26  ;;  %4360 = vmatmul.mubr.msk.f32.gmra.mrb[20].mxu0 %vm398_vm2, %v6381_v1  ;;  %v1660_v26 = vrot.slane %v5529_v9, 1 }
  0xec   : > { %4138 = vmatprep.mubr.msk.f32.mxu1 %vm398_vm2, %v4984_v31  ;;  %4362 = vmatprep.mubr.msk.f32.mxu0 %vm398_vm2, %v6382_v15  ;;  %v1661_v31 = vrot.slane %v5532_v6, 1 }
  0xee   : > { %v5850_v15 = vsel %vm315_vm1, %v1660_v26, %v1661_v31 }
  0xef   : > { %4139 = vmatmul.mubr.msk.f32.gmra.mrb[6].mxu1 %vm398_vm2, %v4987_v32  ;;  %4363 = vmatmul.mubr.msk.f32.gmra.mrb[22].mxu0 %vm398_vm2, %v6383_v18  ;;  %v6386_v32 = vld [vmem:[#allocation42_spill] sm:$0xff]  ;;  %v2472_v18 = vrot.slane %v5726_v62, 1 }
  0xf0   : > { %4141 = vmatprep.mubr.msk.f32.mxu1 %vm398_vm2, %v5024_v42  ;;  %4365 = vmatprep.mubr.msk.f32.mxu0 %vm398_vm2, %v6384_v25  ;;  %v1663_v42 = vrot.slane %v5550_v52, 1  ;;  %v2471_v25 = vrot.slane %v5715_v38, 1  ;;  %v2474_v52 = vrot.slane %v5853_v36, 1 }
  0xf2   : > { %v2473_v26 = vsel %vm315_vm1, %v2471_v25, %v2472_v18 }
  0xf3   : > { %4142 = vmatmul.mubr.msk.f32.gmra.mrb[8].mxu1 %vm398_vm2, %v5027_v43  ;;  %4366 = vmatmul.mubr.msk.f32.gmra.mrb[24].mxu0 %vm398_vm2, %v6385_v33  ;;  %v6387_v43 = vld [vmem:[#allocation43_spill] sm:$0xff] }
  0xf4   : > { %4144 = vmatprep.mubr.msk.f32.mxu1 %vm398_vm2, %v5052_v50  ;;  %4368 = vmatprep.mubr.msk.f32.mxu0 %vm398_vm2, %v6386_v32  ;;  %v5864_v50 = vsel %vm315_vm1, %v1661_v31, %v1663_v42 }
  0xf7   : > { %4145 = vmatmul.mubr.msk.f32.gmra.mrb[10].mxu1 %vm398_vm2, %v5055_v51  ;;  %4369 = vmatmul.mubr.msk.f32.gmra.mrb[26].mxu0 %vm398_vm2, %v6387_v43  ;;  %v2475_v51 = vsel %vm315_vm1, %v2472_v18, %v2474_v52 }
  0xf8   : > { %4147 = vmatprep.mubr.msk.f32.mxu1 %vm398_vm2, %v5078_v58  ;;  %4371 = vmatprep.mubr.msk.f32.mxu0 %vm398_vm2, %v5850_v15  ;;  %v6391_v58 = vld [vmem:[#allocation36_spill] sm:$0xff] }
  0xfb   : > { %4148 = vmatmul.mubr.msk.f32.gmra.mrb[12].mxu1 %vm398_vm2, %v5081_v59  ;;  %4372 = vmatmul.mubr.msk.f32.gmra.mrb[28].mxu0 %vm398_vm2, %v5864_v50  ;;  %v6392_v59 = vld [vmem:[#allocation48_spill] sm:$0xff] }
  0xfc   : > { %4150 = vmatprep.mubr.msk.f32.mxu1 %vm398_vm2, %v5104_v3  ;;  %4374 = vmatprep.mubr.msk.f32.mxu0 %vm398_vm2, %v2473_v26  ;;  %v6393_v3 = vld [vmem:[#allocation38_spill] sm:$0xff] }
  0xff   : > { %4151 = vmatmul.mubr.msk.f32.gmra.mrb[14].mxu1 %vm398_vm2, %v5107_v7  ;;  %4375 = vmatmul.mubr.msk.f32.gmra.mrb[30].mxu0 %vm398_vm2, %v2475_v51  ;;  %v6394_v7 = vld [vmem:[#allocation49_spill] sm:$0xff] }
 0x100   : > { %4153 = vmatprep.mubr.msk.f32.mxu1 %vm398_vm2, %v5145_v28  ;;  %4379 = vmatprep.mubr.msk.f32.mxu0 %vm398_vm2, %v5200_v21  ;;  %v2742_v28 = vrot.slane %v5715_v38, 2  ;;  %v2745_v21 = vrot.slane %v5853_v36, 2 }
 0x103   : > { %4154 = vmatmul.mubr.msk.f32.gmra.mrb[16].mxu1 %vm398_vm2, %v5148_v29  ;;  %4380 = vmatmul.mubr.msk.f32.vlgmr.msra.gmra.mrb[0].mxu0 %vm398_vm2, %v6348_v5  ;;  %v2743_v29 = vrot.slane %v5726_v62, 2 }
 0x104   : > { %4156 = vmatprep.mubr.msk.f32.mxu1 %vm398_vm2, %v5173_v53  ;;  %4382 = vmatprep.mubr.msk.f32.mxu0 %vm398_vm2, %v6349_v11  ;;  %v6397_v53 = vld [vmem:[#allocation51_spill] sm:$0xff] }
 0x107   : > { %4157 = vmatmul.mubr.msk.f32.gmra.mrb[18].mxu1 %vm398_vm2, %v5176_v55  ;;  %4383 = vmatmul.mubr.msk.f32.gmra.mrb[2].mxu0 %vm398_vm2, %v6350_v47  ;;  %v6398_v55 = vld [vmem:[#allocation52_spill] sm:$0xff] }
 0x108   : > { %4159 = vmatprep.mubr.msk.f32.mxu1 %vm398_vm2, %v5205_v22  ;;  %4385 = vmatprep.mubr.msk.f32.mxu0 %vm398_vm2, %v6351_v63  ;;  %v6396_v22 = vld [vmem:[#allocation50_spill] sm:$0xff] }
 0x10b   : > { %4160 = vmatmul.mubr.msk.f32.gmra.mrb[20].mxu1 %vm398_vm2, %v5208_v24  ;;  %4386 = vmatmul.mubr.msk.f32.gmra.mrb[4].mxu0 %vm398_vm2, %v6352_v23  ;;  %v2744_v24 = vsel %vm984_vm3, %v2742_v28, %v2743_v29 }
 0x10c   : > { %4162 = vmatprep.mubr.msk.f32.mxu1 %vm398_vm2, %v5247_v8  ;;  %4388 = vmatprep.mubr.msk.f32.mxu0 %vm398_vm2, %v6353_v57  ;;  %v6395_v8 = vld [vmem:[#allocation40_spill] sm:$0xff] }
 0x10f   : > { %4163 = vmatmul.mubr.msk.f32.gmra.mrb[22].mxu1 %vm398_vm2, %v5250_v10  ;;  %4389 = vmatmul.mubr.msk.f32.gmra.mrb[6].mxu0 %vm398_vm2, %v6354_v30  ;;  %v6399_v10 = vld [vmem:[#allocation53_spill] sm:$0xff] }
 0x110   : > { %4165 = vmatprep.mubr.msk.f32.mxu1 %vm398_vm2, %v5284_v46  ;;  %4391 = vmatprep.mubr.msk.f32.mxu0 %vm398_vm2, %v5349_v19  ;;  %v6388_v46 = vld [vmem:[#allocation37_spill] sm:$0xff] }
 0x113   : > { %4166 = vmatmul.mubr.msk.f32.gmra.mrb[24].mxu1 %vm398_vm2, %v5287_v12  ;;  %4392 = vmatmul.mubr.msk.f32.gmra.mrb[8].mxu0 %vm398_vm2, %v6355_v37  ;;  %v2746_v12 = vsel %vm984_vm3, %v2743_v29, %v2745_v21 }
 0x114   : > { %4168 = vmatprep.mubr.msk.f32.mxu1 %vm398_vm2, %v5319_v20  ;;  %4394 = vmatprep.mubr.msk.f32.mxu0 %vm398_vm2, %v5384_v39 }
 0x117   : > { %4169 = vmatmul.mubr.msk.f32.gmra.mrb[26].mxu1 %vm398_vm2, %v5322_v54  ;;  %4395 = vmatmul.mubr.msk.f32.gmra.mrb[10].mxu0 %vm398_vm2, %v5401_v41 }
 0x118   : > { %4171 = vmatprep.mubr.msk.f32.mxu1 %vm398_vm2, %v5354_v40  ;;  %4397 = vmatprep.mubr.msk.f32.mxu0 %vm398_vm2, %v5408_v13 }
 0x11b   : > { %4172 = vmatmul.mubr.msk.f32.gmra.mrb[28].mxu1 %vm398_vm2, %v6388_v46  ;;  %4398 = vmatmul.mubr.msk.f32.gmra.mrb[12].mxu0 %vm398_vm2, %v5424_v17 }
 0x11c   : > { %4174 = vmatprep.mubr.msk.f32.mxu1 %vm398_vm2, %v5529_v9  ;;  %4400 = vmatprep.mubr.msk.f32.mxu0 %vm398_vm2, %v5428_v61  ;;  %v6389_v9 = vld [vmem:[#allocation44_spill] sm:$0xff] }
 0x11f   : > { %4175 = vmatmul.mubr.msk.f32.gmra.mrb[30].mxu1 %vm398_vm2, %v5532_v6  ;;  %4401 = vmatmul.mubr.msk.f32.gmra.mrb[14].mxu0 %vm398_vm2, %v5441_v45  ;;  %v6390_v6 = vld [vmem:[#allocation47_spill] sm:$0xff] }
 0x120   : > { %4203 = vmatprep.mubr.msk.f32.mxu1 %vm398_vm2, %v6372_v35  ;;  %4403 = vmatprep.mubr.msk.f32.mxu0 %vm398_vm2, %v5445_v0 }
 0x123   : > { %4204 = vmatmul.mubr.msk.f32.vlgmr.msra.gmra.mrb[16].mxu1 %vm398_vm2, %v6373_v44  ;;  %4404 = vmatmul.mubr.msk.f32.gmra.mrb[16].mxu0 %vm398_vm2, %v5465_v16 }
 0x124   : > { %4206 = vmatprep.mubr.msk.f32.mxu1 %vm398_vm2, %v6375_v27  ;;  %4406 = vmatprep.mubr.msk.f32.mxu0 %vm398_vm2, %v6389_v9 }
 0x127   : > { %4207 = vmatmul.mubr.msk.f32.gmra.mrb[18].mxu1 %vm398_vm2, %v6377_v2  ;;  %4407 = vmatmul.mubr.msk.f32.gmra.mrb[18].mxu0 %vm398_vm2, %v5484_v56 }
 0x128   : > { %4209 = vmatprep.mubr.msk.f32.mxu1 %vm398_vm2, %v6378_v48  ;;  %4409 = vmatprep.mubr.msk.f32.mxu0 %vm398_vm2, %v5488_v14 }
 0x12b   : > { %4210 = vmatmul.mubr.msk.f32.gmra.mrb[20].mxu1 %vm398_vm2, %v6379_v34  ;;  %4410 = vmatmul.mubr.msk.f32.gmra.mrb[20].mxu0 %vm398_vm2, %v6365_v4 }
 0x12c   : > { %4212 = vmatprep.mubr.msk.f32.mxu1 %vm398_vm2, %v6380_v60  ;;  %4412 = vmatprep.mubr.msk.f32.mxu0 %vm398_vm2, %v6367_v49 }
 0x12f   : > { %4213 = vmatmul.mubr.msk.f32.gmra.mrb[22].mxu1 %vm398_vm2, %v6381_v1  ;;  %4413 = vmatmul.mubr.msk.f32.gmra.mrb[22].mxu0 %vm398_vm2, %v6390_v6 }
 0x130   : > { %4215 = vmatprep.mubr.msk.f32.mxu1 %vm398_vm2, %v6391_v58  ;;  %4415 = vmatprep.mubr.msk.f32.mxu0 %vm398_vm2, %v6392_v59 }
 0x133   : > { %4216 = vmatmul.mubr.msk.f32.gmra.mrb[24].mxu1 %vm398_vm2, %v6393_v3  ;;  %4416 = vmatmul.mubr.msk.f32.gmra.mrb[24].mxu0 %vm398_vm2, %v6394_v7 }
 0x134   : > { %4218 = vmatprep.mubr.msk.f32.mxu1 %vm398_vm2, %v6395_v8  ;;  %4418 = vmatprep.mubr.msk.f32.mxu0 %vm398_vm2, %v6396_v22 }
 0x137   : > { %4219 = vmatmul.mubr.msk.f32.gmra.mrb[26].mxu1 %vm398_vm2, %v6385_v33  ;;  %4419 = vmatmul.mubr.msk.f32.gmra.mrb[26].mxu0 %vm398_vm2, %v6397_v53 }
 0x138   : > { %4221 = vmatprep.mubr.msk.f32.mxu1 %vm398_vm2, %v6386_v32  ;;  %4421 = vmatprep.mubr.msk.f32.mxu0 %vm398_vm2, %v6398_v55 }
 0x13b   : > { %4222 = vmatmul.mubr.msk.f32.gmra.mrb[28].mxu1 %vm398_vm2, %v6387_v43  ;;  %4422 = vmatmul.mubr.msk.f32.gmra.mrb[28].mxu0 %vm398_vm2, %v6399_v10 }
 0x13c   : > { %4224 = vmatprep.mubr.msk.f32.mxu1 %vm398_vm2, %v5850_v15  ;;  %4424 = vmatprep.mubr.msk.f32.mxu0 %vm398_vm2, %v2744_v24 }
 0x13f   : > { %4225 = vmatmul.mubr.msk.f32.gmra.mrb[30].mxu1 %vm398_vm2, %v5864_v50  ;;  %4425 = vmatmul.mubr.msk.f32.gmra.mrb[30].mxu0 %vm398_vm2, %v2746_v12 }
 0x1b6   : > { %v4131_v40 = vpop.f32.mrb[0].mxu1 }
 0x1b7   : > { %v1468_v20 = vpop.f32.mrb[1].mxu1 }
 0x1ba   : > { %v4134_v54 = vpop.f32.mrb[2].mxu1 }
 0x1bb   : > { %v1478_v19 = vpop.f32.mrb[3].mxu1 }
 0x1be   : > { %v4137_v13 = vpop.f32.mrb[4].mxu1 }
 0x1bf   : > { %v1488_v39 = vpop.f32.mrb[5].mxu1 }
 0x1c2   : > { %v4140_v41 = vpop.f32.mrb[6].mxu1 }
 0x1c3   : > { %v1498_v17 = vpop.f32.mrb[7].mxu1 }
 0x1c6   : > { %v6010_v61 = vpop.f32.mrb[8].mxu1 }
 0x1c7   : > { %v6012_v45 = vpop.f32.mrb[9].mxu1 }
 0x1ca   : > { %v6014_v0 = vpop.f32.mrb[10].mxu1 }
 0x1cb   : > { %v6016_v16 = vpop.f32.mrb[11].mxu1 }
 0x1ce   : > { %v6018_v49 = vpop.f32.mrb[12].mxu1 }
 0x1cf   : > { %v6020_v56 = vpop.f32.mrb[13].mxu1 }
 0x1d2   : > { %v6022_v14 = vpop.f32.mrb[14].mxu1 }
 0x1d3   : > { %v6024_v36 = vpop.f32.mrb[15].mxu1 }
 0x1d6   : > { %v4381_v33 = vpop.f32.mrb[0].mxu0 }
 0x1d7   : > { %v4429_v48 = vadd.f32 %v4381_v33, %v4131_v40  ;;  %v2822_v5 = vpop.f32.mrb[1].mxu0 }
 0x1d8   : > { %v4430_v11 = vadd.f32 %v2822_v5, %v1468_v20 }
 0x1d9   : > { %3015 = vst.msk [vmem:[%s6030_s9 + $0x8] sm:$0xff] %vm3013_vm4, %v4429_v48  ;;  %v3047_v47 = vsel %vm3013_vm4, %v4429_v48, 0.0  ;;  %v3116_v63 = vmul.f32 %v4429_v48, %v4429_v48 }
 0x1da   : > { %3014 = vst.msk [vmem:[%s6030_s9] sm:$0xff] %vm3013_vm4, %v4430_v11  ;;  %v3046_v23 = vsel %vm3013_vm4, %v4430_v11, 0.0  ;;  %v3115_v57 = vmul.f32 %v4430_v11, %v4430_v11  ;;  %v4384_v30 = vpop.f32.mrb[2].mxu0 }
 0x1db   : > { %v3148_v38 = vsel %vm3013_vm4, %v3116_v63, 0.0  ;;  %v3048_v37 = vadd.f32 %v3047_v47, %v3046_v23  ;;  %v4431_v62 = vadd.f32 %v4384_v30, %v4134_v54  ;;  %v2832_v4 = vpop.f32.mrb[3].mxu0 }
 0x1dc   : > { %v3147_v35 = vsel %vm3013_vm4, %v3115_v57, 0.0  ;;  %v4432_v44 = vadd.f32 %v2832_v4, %v1478_v19 }
 0x1dd   : > { %v3149_v27 = vadd.f32 %v3148_v38, %v3147_v35  ;;  %3017 = vst.msk [vmem:[%s6030_s9 + $0x18] sm:$0xff] %vm3013_vm4, %v4431_v62  ;;  %v3118_v2 = vmul.f32 %v4431_v62, %v4431_v62  ;;  %v3051_v31 = vsel %vm3013_vm4, %v4431_v62, 0.0 }
 0x1de   : > { %3016 = vst.msk [vmem:[%s6030_s9 + $0x10] sm:$0xff] %vm3013_vm4, %v4432_v44  ;;  %v3049_v34 = vsel %vm3013_vm4, %v4432_v44, 0.0  ;;  %v3117_v60 = vmul.f32 %v4432_v44, %v4432_v44  ;;  %v4387_v1 = vpop.f32.mrb[4].mxu0 }
 0x1df   : > { %v3050_v15 = vadd.f32 %v3049_v34, %v3048_v37  ;;  %v4433_v18 = vadd.f32 %v4387_v1, %v4137_v13  ;;  %v2842_v25 = vpop.f32.mrb[5].mxu0  ;;  %v3152_v52 = vsel %vm3013_vm4, %v3118_v2, 0.0 }
 0x1e0   : > { %v3150_v32 = vsel %vm3013_vm4, %v3117_v60, 0.0  ;;  %v4434_v42 = vadd.f32 %v2842_v25, %v1488_v39 }
 0x1e1   : > { %v3151_v43 = vadd.f32 %v3150_v32, %v3149_v27  ;;  %3019 = vst.msk [vmem:[%s6030_s9 + $0x28] sm:$0xff] %vm3013_vm4, %v4433_v18  ;;  %v3052_v50 = vadd.f32 %v3051_v31, %v3050_v15  ;;  %v3120_v26 = vmul.f32 %v4433_v18, %v4433_v18  ;;  %v3055_v7 = vsel %vm3013_vm4, %v4433_v18, 0.0 }
 0x1e2   : > { %3018 = vst.msk [vmem:[%s6030_s9 + $0x20] sm:$0xff] %vm3013_vm4, %v4434_v42  ;;  %v3053_v51 = vsel %vm3013_vm4, %v4434_v42, 0.0  ;;  %v3119_v46 = vmul.f32 %v4434_v42, %v4434_v42  ;;  %v4390_v9 = vpop.f32.mrb[6].mxu0 }
 0x1e3   : > { %v3054_v6 = vadd.f32 %v3053_v51, %v3052_v50  ;;  %v3153_v58 = vadd.f32 %v3152_v52, %v3151_v43  ;;  %v4435_v59 = vadd.f32 %v4390_v9, %v4140_v41  ;;  %v2852_v3 = vpop.f32.mrb[7].mxu0  ;;  %v3156_v53 = vsel %vm3013_vm4, %v3120_v26, 0.0 }
 0x1e4   : > { %v3154_v8 = vsel %vm3013_vm4, %v3119_v46, 0.0  ;;  %v4436_v22 = vadd.f32 %v2852_v3, %v1498_v17 }
 0x1e5   : > { %v3155_v28 = vadd.f32 %v3154_v8, %v3153_v58  ;;  %3021 = vst.msk [vmem:[%s6030_s9 + $0x38] sm:$0xff] %vm3013_vm4, %v4435_v59  ;;  %v3056_v29 = vadd.f32 %v3055_v7, %v3054_v6  ;;  %v3122_v55 = vmul.f32 %v4435_v59, %v4435_v59  ;;  %v3059_v19 = vsel %vm3013_vm4, %v4435_v59, 0.0 }
 0x1e6   : > { %3020 = vst.msk [vmem:[%s6030_s9 + $0x30] sm:$0xff] %vm3013_vm4, %v4436_v22  ;;  %v3057_v21 = vsel %vm3013_vm4, %v4436_v22, 0.0  ;;  %v3121_v24 = vmul.f32 %v4436_v22, %v4436_v22  ;;  %v4393_v10 = vpop.f32.mrb[8].mxu0 }
 0x1e7   : > { %v3058_v12 = vadd.f32 %v3057_v21, %v3056_v29  ;;  %v3157_v40 = vadd.f32 %v3156_v53, %v3155_v28  ;;  %v4437_v20 = vadd.f32 %v4393_v10, %v6010_v61  ;;  %v2862_v54 = vpop.f32.mrb[9].mxu0  ;;  %v3160_v33 = vsel %vm3013_vm4, %v3122_v55, 0.0 }
 0x1e8   : > { %v3158_v13 = vsel %vm3013_vm4, %v3121_v24, 0.0  ;;  %v4438_v39 = vadd.f32 %v2862_v54, %v6012_v45 }
 0x1e9   : > { %v3159_v41 = vadd.f32 %v3158_v13, %v3157_v40  ;;  %3023 = vst.msk [vmem:[%s6030_s9 + $0x48] sm:$0xff] %vm3013_vm4, %v4437_v20  ;;  %v3060_v17 = vadd.f32 %v3059_v19, %v3058_v12  ;;  %v3124_v48 = vmul.f32 %v4437_v20, %v4437_v20  ;;  %v3063_v57 = vsel %vm3013_vm4, %v4437_v20, 0.0 }
 0x1ea   : > { %3022 = vst.msk [vmem:[%s6030_s9 + $0x40] sm:$0xff] %vm3013_vm4, %v4438_v39  ;;  %v3061_v61 = vsel %vm3013_vm4, %v4438_v39, 0.0  ;;  %v3123_v5 = vmul.f32 %v4438_v39, %v4438_v39  ;;  %v4396_v11 = vpop.f32.mrb[10].mxu0 }
 0x1eb   : > { %v3062_v47 = vadd.f32 %v3061_v61, %v3060_v17  ;;  %v3161_v63 = vadd.f32 %v3160_v33, %v3159_v41  ;;  %v4439_v23 = vadd.f32 %v4396_v11, %v6014_v0  ;;  %v2872_v45 = vpop.f32.mrb[11].mxu0  ;;  %v3164_v4 = vsel %vm3013_vm4, %v3124_v48, 0.0 }
 0x1ec   : > { %v3162_v30 = vsel %vm3013_vm4, %v3123_v5, 0.0  ;;  %v4440_v38 = vadd.f32 %v2872_v45, %v6016_v16 }
 0x1ed   : > { %v3163_v37 = vadd.f32 %v3162_v30, %v3161_v63  ;;  %3025 = vst.msk [vmem:[%s6030_s9 + $0x58] sm:$0xff] %vm3013_vm4, %v4439_v23  ;;  %v3064_v62 = vadd.f32 %v3063_v57, %v3062_v47  ;;  %v3126_v35 = vmul.f32 %v4439_v23, %v4439_v23  ;;  %v3067_v1 = vsel %vm3013_vm4, %v4439_v23, 0.0 }
 0x1ee   : > { %3024 = vst.msk [vmem:[%s6030_s9 + $0x50] sm:$0xff] %vm3013_vm4, %v4440_v38  ;;  %v3065_v0 = vsel %vm3013_vm4, %v4440_v38, 0.0  ;;  %v3125_v44 = vmul.f32 %v4440_v38, %v4440_v38  ;;  %v4399_v27 = vpop.f32.mrb[12].mxu0 }
 0x1ef   : > { %v3066_v2 = vadd.f32 %v3065_v0, %v3064_v62  ;;  %v3165_v34 = vadd.f32 %v3164_v4, %v3163_v37  ;;  %v4441_v60 = vadd.f32 %v4399_v27, %v6018_v49  ;;  %v2882_v16 = vpop.f32.mrb[13].mxu0  ;;  %v3168_v32 = vsel %vm3013_vm4, %v3126_v35, 0.0 }
 0x1f0   : > { %v3166_v15 = vsel %vm3013_vm4, %v3125_v44, 0.0  ;;  %v4442_v18 = vadd.f32 %v2882_v16, %v6020_v56 }
 0x1f1   : > { %v3167_v25 = vadd.f32 %v3166_v15, %v3165_v34  ;;  %3027 = vst.msk [vmem:[%s6030_s9 + $0x68] sm:$0xff] %vm3013_vm4, %v4441_v60  ;;  %v3068_v31 = vadd.f32 %v3067_v1, %v3066_v2  ;;  %v3128_v42 = vmul.f32 %v4441_v60, %v4441_v60  ;;  %v3071_v46 = vsel %vm3013_vm4, %v4441_v60, 0.0 }
 0x1f2   : > { %3026 = vst.msk [vmem:[%s6030_s9 + $0x60] sm:$0xff] %vm3013_vm4, %v4442_v18  ;;  %v3069_v43 = vsel %vm3013_vm4, %v4442_v18, 0.0  ;;  %v3127_v49 = vmul.f32 %v4442_v18, %v4442_v18  ;;  %v4402_v50 = vpop.f32.mrb[14].mxu0 }
 0x1f3   : > { %v3070_v52 = vadd.f32 %v3069_v43, %v3068_v31  ;;  %v3169_v26 = vadd.f32 %v3168_v32, %v3167_v25  ;;  %v4443_v51 = vadd.f32 %v4402_v50, %v6022_v14  ;;  %v2892_v56 = vpop.f32.mrb[15].mxu0  ;;  %v3172_v7 = vsel %vm3013_vm4, %v3128_v42, 0.0 }
 0x1f4   : > { %v3170_v9 = vsel %vm3013_vm4, %v3127_v49, 0.0  ;;  %v4444_v6 = vadd.f32 %v2892_v56, %v6024_v36 }
 0x1f5   : > { %v3171_v58 = vadd.f32 %v3170_v9, %v3169_v26  ;;  %3029 = vst.msk [vmem:[%s6030_s9 + $0x78] sm:$0xff] %vm3013_vm4, %v4443_v51  ;;  %v3072_v59 = vadd.f32 %v3071_v46, %v3070_v52  ;;  %v3130_v8 = vmul.f32 %v4443_v51, %v4443_v51  ;;  %v3075_v24 = vsel %vm3013_vm4, %v4443_v51, 0.0 }
 0x1f6   : > { %v4205_v3 = vpop.f32.mrb[16].mxu1  ;;  %3028 = vst.msk [vmem:[%s6030_s9 + $0x70] sm:$0xff] %vm3013_vm4, %v4444_v6  ;;  %v3073_v14 = vsel %vm3013_vm4, %v4444_v6, 0.0  ;;  %v3129_v22 = vmul.f32 %v4444_v6, %v4444_v6  ;;  %v4405_v28 = vpop.f32.mrb[16].mxu0 }
 0x1f7   : > { %v1820_v29 = vpop.f32.mrb[17].mxu1  ;;  %v3074_v53 = vadd.f32 %v3073_v14, %v3072_v59  ;;  %v3173_v55 = vadd.f32 %v3172_v7, %v3171_v58  ;;  %v4445_v36 = vadd.f32 %v4405_v28, %v4205_v3  ;;  %v2902_v21 = vpop.f32.mrb[17].mxu0  ;;  %v3176_v19 = vsel %vm3013_vm4, %v3130_v8, 0.0 }
 0x1f8   : > { %v3174_v10 = vsel %vm3013_vm4, %v3129_v22, 0.0  ;;  %v4446_v12 = vadd.f32 %v2902_v21, %v1820_v29 }
 0x1f9   : > { %v3175_v40 = vadd.f32 %v3174_v10, %v3173_v55  ;;  %3031 = vst.msk [vmem:[%s6030_s9 + $0x88] sm:$0xff] %vm3013_vm4, %v4445_v36  ;;  %v3076_v20 = vadd.f32 %v3075_v24, %v3074_v53  ;;  %v3132_v13 = vmul.f32 %v4445_v36, %v4445_v36  ;;  %v3079_v47 = vsel %vm3013_vm4, %v4445_v36, 0.0 }
 0x1fa   : > { %v4208_v54 = vpop.f32.mrb[18].mxu1  ;;  %3030 = vst.msk [vmem:[%s6030_s9 + $0x80] sm:$0xff] %vm3013_vm4, %v4446_v12  ;;  %v3077_v39 = vsel %vm3013_vm4, %v4446_v12, 0.0  ;;  %v3131_v41 = vmul.f32 %v4446_v12, %v4446_v12  ;;  %v4408_v17 = vpop.f32.mrb[18].mxu0 }
 0x1fb   : > { %v1830_v33 = vpop.f32.mrb[19].mxu1  ;;  %v3078_v48 = vadd.f32 %v3077_v39, %v3076_v20  ;;  %v3177_v61 = vadd.f32 %v3176_v19, %v3175_v40  ;;  %v4447_v5 = vadd.f32 %v4408_v17, %v4208_v54  ;;  %v2912_v11 = vpop.f32.mrb[19].mxu0  ;;  %v3180_v38 = vsel %vm3013_vm4, %v3132_v13, 0.0 }
 0x1fc   : > { %v3178_v63 = vsel %vm3013_vm4, %v3131_v41, 0.0  ;;  %v4448_v23 = vadd.f32 %v2912_v11, %v1830_v33 }
 0x1fd   : > { %v3179_v45 = vadd.f32 %v3178_v63, %v3177_v61  ;;  %3033 = vst.msk [vmem:[%s6030_s9 + $0x98] sm:$0xff] %vm3013_vm4, %v4447_v5  ;;  %v3080_v57 = vadd.f32 %v3079_v47, %v3078_v48  ;;  %v3134_v37 = vmul.f32 %v4447_v5, %v4447_v5  ;;  %v3083_v60 = vsel %vm3013_vm4, %v4447_v5, 0.0 }
 0x1fe   : > { %v4211_v30 = vpop.f32.mrb[20].mxu1  ;;  %3032 = vst.msk [vmem:[%s6030_s9 + $0x90] sm:$0xff] %vm3013_vm4, %v4448_v23  ;;  %v3081_v62 = vsel %vm3013_vm4, %v4448_v23, 0.0  ;;  %v3133_v4 = vmul.f32 %v4448_v23, %v4448_v23  ;;  %v4411_v35 = vpop.f32.mrb[20].mxu0 }
 0x1ff   : > { %v1840_v0 = vpop.f32.mrb[21].mxu1  ;;  %v3082_v44 = vadd.f32 %v3081_v62, %v3080_v57  ;;  %v3181_v27 = vadd.f32 %v3180_v38, %v3179_v45  ;;  %v4449_v2 = vadd.f32 %v4411_v35, %v4211_v30  ;;  %v2922_v34 = vpop.f32.mrb[21].mxu0  ;;  %v3184_v31 = vsel %vm3013_vm4, %v3134_v37, 0.0 }
 0x200   : > { %v3182_v16 = vsel %vm3013_vm4, %v3133_v4, 0.0  ;;  %v4450_v1 = vadd.f32 %v2922_v34, %v1840_v0 }
 0x201   : > { %v3183_v15 = vadd.f32 %v3182_v16, %v3181_v27  ;;  %3035 = vst.msk [vmem:[%s6030_s9 + $0xa8] sm:$0xff] %vm3013_vm4, %v4449_v2  ;;  %v3084_v18 = vadd.f32 %v3083_v60, %v3082_v44  ;;  %v3136_v32 = vmul.f32 %v4449_v2, %v4449_v2  ;;  %v3087_v46 = vsel %vm3013_vm4, %v4449_v2, 0.0 }
 0x202   : > { %v4214_v25 = vpop.f32.mrb[22].mxu1  ;;  %3034 = vst.msk [vmem:[%s6030_s9 + $0xa0] sm:$0xff] %vm3013_vm4, %v4450_v1  ;;  %v3085_v42 = vsel %vm3013_vm4, %v4450_v1, 0.0  ;;  %v3135_v43 = vmul.f32 %v4450_v1, %v4450_v1  ;;  %v4414_v49 = vpop.f32.mrb[22].mxu0 }
 0x203   : > { %v1850_v50 = vpop.f32.mrb[23].mxu1  ;;  %v3086_v52 = vadd.f32 %v3085_v42, %v3084_v18  ;;  %v3185_v26 = vadd.f32 %v3184_v31, %v3183_v15  ;;  %v4451_v51 = vadd.f32 %v4414_v49, %v4214_v25  ;;  %v2932_v56 = vpop.f32.mrb[23].mxu0  ;;  %v3188_v7 = vsel %vm3013_vm4, %v3136_v32, 0.0 }
 0x204   : > { %v3186_v9 = vsel %vm3013_vm4, %v3135_v43, 0.0  ;;  %v4452_v6 = vadd.f32 %v2932_v56, %v1850_v50 }
 0x205   : > { %v3187_v58 = vadd.f32 %v3186_v9, %v3185_v26  ;;  %3037 = vst.msk [vmem:[%s6030_s9 + $0xb8] sm:$0xff] %vm3013_vm4, %v4451_v51  ;;  %v3088_v59 = vadd.f32 %v3087_v46, %v3086_v52  ;;  %v3138_v8 = vmul.f32 %v4451_v51, %v4451_v51  ;;  %v3091_v24 = vsel %vm3013_vm4, %v4451_v51, 0.0 }
 0x206   : > { %v4217_v3 = vpop.f32.mrb[24].mxu1  ;;  %3036 = vst.msk [vmem:[%s6030_s9 + $0xb0] sm:$0xff] %vm3013_vm4, %v4452_v6  ;;  %v3089_v14 = vsel %vm3013_vm4, %v4452_v6, 0.0  ;;  %v3137_v22 = vmul.f32 %v4452_v6, %v4452_v6  ;;  %v4417_v28 = vpop.f32.mrb[24].mxu0 }
 0x207   : > { %v1860_v29 = vpop.f32.mrb[25].mxu1  ;;  %v3090_v53 = vadd.f32 %v3089_v14, %v3088_v59  ;;  %v3189_v55 = vadd.f32 %v3188_v7, %v3187_v58  ;;  %v4453_v36 = vadd.f32 %v4417_v28, %v4217_v3  ;;  %v2942_v21 = vpop.f32.mrb[25].mxu0  ;;  %v3192_v19 = vsel %vm3013_vm4, %v3138_v8, 0.0 }
 0x208   : > { %v3190_v10 = vsel %vm3013_vm4, %v3137_v22, 0.0  ;;  %v4454_v12 = vadd.f32 %v2942_v21, %v1860_v29 }
 0x209   : > { %v3191_v40 = vadd.f32 %v3190_v10, %v3189_v55  ;;  %3039 = vst.msk [vmem:[%s6030_s9 + $0xc8] sm:$0xff] %vm3013_vm4, %v4453_v36  ;;  %v3092_v20 = vadd.f32 %v3091_v24, %v3090_v53  ;;  %v3140_v13 = vmul.f32 %v4453_v36, %v4453_v36  ;;  %v3095_v47 = vsel %vm3013_vm4, %v4453_v36, 0.0 }
 0x20a   : > { %v4220_v54 = vpop.f32.mrb[26].mxu1  ;;  %3038 = vst.msk [vmem:[%s6030_s9 + $0xc0] sm:$0xff] %vm3013_vm4, %v4454_v12  ;;  %v3093_v39 = vsel %vm3013_vm4, %v4454_v12, 0.0  ;;  %v3139_v41 = vmul.f32 %v4454_v12, %v4454_v12  ;;  %v4420_v17 = vpop.f32.mrb[26].mxu0 }
 0x20b   : > { %v1870_v33 = vpop.f32.mrb[27].mxu1  ;;  %v3094_v48 = vadd.f32 %v3093_v39, %v3092_v20  ;;  %v3193_v61 = vadd.f32 %v3192_v19, %v3191_v40  ;;  %v4455_v5 = vadd.f32 %v4420_v17, %v4220_v54  ;;  %v2952_v11 = vpop.f32.mrb[27].mxu0  ;;  %v3196_v38 = vsel %vm3013_vm4, %v3140_v13, 0.0 }
 0x20c   : > { %v3194_v63 = vsel %vm3013_vm4, %v3139_v41, 0.0  ;;  %v4456_v23 = vadd.f32 %v2952_v11, %v1870_v33 }
 0x20d   : > { %v3195_v45 = vadd.f32 %v3194_v63, %v3193_v61  ;;  %3041 = vst.msk [vmem:[%s6030_s9 + $0xd8] sm:$0xff] %vm3013_vm4, %v4455_v5  ;;  %v3096_v57 = vadd.f32 %v3095_v47, %v3094_v48  ;;  %v3142_v37 = vmul.f32 %v4455_v5, %v4455_v5  ;;  %v3099_v60 = vsel %vm3013_vm4, %v4455_v5, 0.0 }
 0x20e   : > { %v4223_v30 = vpop.f32.mrb[28].mxu1  ;;  %3040 = vst.msk [vmem:[%s6030_s9 + $0xd0] sm:$0xff] %vm3013_vm4, %v4456_v23  ;;  %v3097_v62 = vsel %vm3013_vm4, %v4456_v23, 0.0  ;;  %v3141_v4 = vmul.f32 %v4456_v23, %v4456_v23  ;;  %v4423_v35 = vpop.f32.mrb[28].mxu0 }
 0x20f   : > { %v1880_v0 = vpop.f32.mrb[29].mxu1  ;;  %v3098_v44 = vadd.f32 %v3097_v62, %v3096_v57  ;;  %v3197_v27 = vadd.f32 %v3196_v38, %v3195_v45  ;;  %v4457_v2 = vadd.f32 %v4423_v35, %v4223_v30  ;;  %v2962_v34 = vpop.f32.mrb[29].mxu0  ;;  %v3200_v31 = vsel %vm3013_vm4, %v3142_v37, 0.0 }
 0x210   : > { %v3198_v16 = vsel %vm3013_vm4, %v3141_v4, 0.0  ;;  %v4458_v1 = vadd.f32 %v2962_v34, %v1880_v0 }
 0x211   : > { %v3199_v15 = vadd.f32 %v3198_v16, %v3197_v27  ;;  %3043 = vst.msk [vmem:[%s6030_s9 + $0xe8] sm:$0xff] %vm3013_vm4, %v4457_v2  ;;  %v3100_v18 = vadd.f32 %v3099_v60, %v3098_v44  ;;  %v3144_v32 = vmul.f32 %v4457_v2, %v4457_v2  ;;  %v3103_v46 = vsel %vm3013_vm4, %v4457_v2, 0.0 }
 0x212   : > { %v4226_v25 = vpop.f32.mrb[30].mxu1  ;;  %3042 = vst.msk [vmem:[%s6030_s9 + $0xe0] sm:$0xff] %vm3013_vm4, %v4458_v1  ;;  %v3101_v42 = vsel %vm3013_vm4, %v4458_v1, 0.0  ;;  %v3143_v43 = vmul.f32 %v4458_v1, %v4458_v1  ;;  %v4426_v49 = vpop.f32.mrb[30].mxu0 }
 0x213   : > { %v1890_v50 = vpop.f32.mrb[31].mxu1  ;;  %v3102_v52 = vadd.f32 %v3101_v42, %v3100_v18  ;;  %v3201_v26 = vadd.f32 %v3200_v31, %v3199_v15  ;;  %v4459_v51 = vadd.f32 %v4426_v49, %v4226_v25  ;;  %v2972_v56 = vpop.f32.mrb[31].mxu0  ;;  %v3204_v8 = vsel %vm3013_vm4, %v3144_v32, 0.0 }
 0x214   : > { %v3202_v9 = vsel %vm3013_vm4, %v3143_v43, 0.0  ;;  %v4460_v6 = vadd.f32 %v2972_v56, %v1890_v50 }
 0x215   : > { %v3203_v58 = vadd.f32 %v3202_v9, %v3201_v26  ;;  %3045 = vst.msk [vmem:[%s6030_s9 + $0xf8] sm:$0xff] %vm3013_vm4, %v4459_v51  ;;  %v3107_v59 = vsel %vm3013_vm4, %v4459_v51, 0.0  ;;  %v3146_v3 = vmul.f32 %v4459_v51, %v4459_v51  ;;  %v3104_v7 = vadd.f32 %v3103_v46, %v3102_v52 }
 0x216   : > { %3044 = vst.msk [vmem:[%s6030_s9 + $0xf0] sm:$0xff] %vm3013_vm4, %v4460_v6  ;;  %v3105_v14 = vsel %vm3013_vm4, %v4460_v6, 0.0  ;;  %v3145_v22 = vmul.f32 %v4460_v6, %v4460_v6 }
 0x217   : > { %v3208_v28 = vsel %vm3013_vm4, %v3146_v3, 0.0  ;;  %v3106_v29 = vadd.f32 %v3105_v14, %v3104_v7  ;;  %v3205_v53 = vadd.f32 %v3204_v8, %v3203_v58 }
 0x218   : > { %v3206_v55 = vsel %vm3013_vm4, %v3145_v22, 0.0 }
 0x219   : > { %v3108_v36 = vadd.f32 %v3107_v59, %v3106_v29  ;;  %v3207_v21 = vadd.f32 %v3206_v55, %v3205_v53 }
 0x21b   : > { %v3109_v24 = vrot.slane %v3108_v36, 4  ;;  %v3209_v10 = vadd.f32 %v3208_v28, %v3207_v21 }
 0x21d   : > { %v3110_v12 = vadd.f32 %v3109_v24, %v3108_v36  ;;  %v3210_v40 = vrot.slane %v3209_v10, 4 }
 0x21f   : > { %v3111_v20 = vrot.slane %v3110_v12, 2  ;;  %v3211_v54 = vadd.f32 %v3210_v40, %v3209_v10 }
 0x221   : > { %v3112_v19 = vadd.f32 %v3111_v20, %v3110_v12  ;;  %v3212_v13 = vrot.slane %v3211_v54, 2 }
 0x223   : > { %v3113_v39 = vrot.slane %v3112_v19, 1  ;;  %v3213_v41 = vadd.f32 %v3212_v13, %v3211_v54 }
 0x225   : > { %v3214_v17 = vrot.slane %v3213_v41, 1  ;;  %v3114_v33 = vadd.f32 %v3113_v39, %v3112_v19 }
 0x227   : > { %v3215_v48 = vadd.f32 %v3214_v17, %v3213_v41 }
 0x229   : > { %v3217_v61 = vsel %vm3216_vm5, %v3114_v33, %v3215_v48 }
 0x22a   : > { %3219 = vst.msk [vmem:[%s192_s18] sm:$0x3] %vm3218_vm6, %v3217_v61 }
 0x22b   : > { %4754 = shalt.err (!%p4751_p5)
}
 0x22c   : > { %s4755_s4 = scalar_lea.hbm %s6173_s26, 32  ;;  %s4759_s8 = scalar_lea.hbm %s6223_s3, 64 }
 0x22d   : > { %p4756_p6 = scmp.ne.s32.totalorder %s6173_s26, %s4755_s4  ;;  %p4760_p10 = scmp.lt.u32.totalorder %s6173_s26, %s6223_s3 }
 0x22e   : > { %p4761_p11 = scmp.lt.u32.totalorder %s4759_s8, %s4755_s4  ;;  %p4763_p13 = scmp.lt.u32.totalorder %s4755_s4, %s6173_s26 }
 0x22f   : > { %p4757_p7 = pnand %p4756_p6, %p4882_p4 }
 0x230   : > { %p4762_p12 = por %p4761_p11, %p4760_p10 }
 0x231   : > { %p4758_p9 = pneg %p4757_p7 }
 0x232   : > { %p4764_p0 = por %p4763_p13, %p4762_p12 }
 0x234   : > { %p4765_p1 = pnand %p4764_p0, %p4758_p9 }
 0x236   : > { %4768 = shalt.err (!%p4765_p1)
}
 0x237   : > { %4686 = dma.vmem_to_hbm [thread:$0]  (%p4882_p4), %s6175_s19, 32, %s6173_s26, %s3231_s27  }
 0x238 PF: > { %p4692_p2 = scmp.ge.s32.totalorder %s4819_s17, 2  ;;  %s3274_s10 = sand.u32 1, %s4799_s12  }
 0x239   : > { %s3275_s11 = scalar_lea.sflag [#allocation3], %s3274_s10 }
 0x23a   : > { %p4689_p3 = pnand %p4692_p2, %p4889_p8 }
 0x23c   : > { %4794 = dma.done.wait (!%p4689_p3), %s3275_s11, 32  }
 0x23d   : > { %4796 = vsyncadd (!%p4689_p3), %s3275_s11, 4294967264  ;;  %s17_s17 = sadd.s32 1, %s4819_s17   ;;  %s6400_s12 = smov %s4803_s13 }
 0x23e   : > { %p14_p5 = scmp.ge.s32.totalorder %s17_s17, 4   ;;  %s6401_s13 = smov %s4807_s14 }
 0x23f   : > { %s6402_s14 = smov %s4895_s25  ;;  %s6403_s15 = smov %s4815_s16 }
 0x240   : > { %s6404_s16 = smov %s6406_s20  ;;  %16 = sbr.rel (!%p14_p5) target bundleno = 4 (0x4), region = 84 }
 0x247   :  { %3280 = vsyncpa [#allocation3], 1 }
 0x248   :  { %3282 = vsyncpa [#allocation3 + $0x1], 1 }

</bundles_post_ra>
